<compile_context>
chip_gen: v6e
topology: v6e:2x2x1
jax: 0.10.0
libtpu: 0.0.40
codegen_flags: <defaults>
</compile_context>

<pallas_src>
import jax
import jax.numpy as jnp
from jax.experimental import pallas as pl
from jax.experimental.pallas import tpu as pltpu  # noqa: F401  (TPU backend)

# ---- small synthetic config (bert-base shapes scaled down) ----
VOCAB = 128          # vocab_size
HIDDEN = 32          # hidden_size
N_LAYERS = 2
N_HEADS = 4
HEAD_DIM = HIDDEN // N_HEADS
INTER = 4 * HIDDEN   # intermediate_size
MAX_POS = 16         # max_position_embeddings
TYPE_VOCAB = 2       # type_vocab_size
POS_TAG_VOCAB = 18   # the extra nn.Embedding(18, hidden)
LN_EPS = 1e-12

BATCH = 2
SEQ = 8

# Packed "small parameter" slab layout: one lane-dense (8,128) tile per layer
# plus one for the MLM head (instead of 15 separate (1,·) inputs).
SLAB_ROWS, SLAB_LANES = 8, 128
(R_BQKV, R_BO, R_LN1G, R_LN1B, R_B1, R_B2, R_LN2G, R_LN2B) = range(8)   # layer slab rows
(R_MLM_B, R_MLM_LNG, R_MLM_LNB, R_DEC_B) = range(4)                     # head slab rows


# ---------------- fused forward kernel ----------------

def fused_forward_kernel(
    h0_ref, bias_ref, lab1h_ref, wemb_ref,
    wqkv_ref, wo_ref, w1_ref, w2_ref, mlmw_ref,
    lslab_ref, hslab_ref,
    logits_ref, lossrow_ref,
):
    f32, bf16 = jnp.float32, jnp.bfloat16
    H, nH, d = HIDDEN, N_HEADS, HEAD_DIM
    B, S = BATCH, SEQ
    N = B * S
    scale = 1.0 / float(d) ** 0.5

    def row(slab, r, width):                      # (1, width) lane-dense slice
        return slab[r:r + 1, :width]

    def layer_norm(x, g, b):                      # f32 math on all generations
        mu = jnp.mean(x, axis=-1, keepdims=True)
        var = jnp.mean((x - mu) ** 2, axis=-1, keepdims=True)
        return (x - mu) * jax.lax.rsqrt(var + LN_EPS) * g + b

    h = h0_ref[...]                               # (N, H) f32, stays resident in vregs/VMEM
    bias = bias_ref[...]                          # (nH*B, 1, S) additive attention bias

    for l in range(N_LAYERS):
        sl = lslab_ref[l]                         # (8, 128) packed per-layer small params

        # ---- fused QKV projection: one bf16 MXU pass, f32 accumulate
        qkv = jnp.dot(h.astype(bf16), wqkv_ref[l],
                      preferred_element_type=f32) + row(sl, R_BQKV, 3 * H)      # (N, 3H)

        # ---- head-batched attention: heads folded into the einsum batch dim.
        # (leading-dim slices / reshapes / concatenate only -> compile-safe)
        qs, ks, vs = [], [], []
        for hh in range(nH):
            qs.append(qkv[:, hh * d:(hh + 1) * d].reshape(B, S, d))
            ks.append(qkv[:, H + hh * d:H + (hh + 1) * d].reshape(B, S, d))
            vs.append(qkv[:, 2 * H + hh * d:2 * H + (hh + 1) * d].reshape(B, S, d))
        qh = jnp.concatenate(qs, axis=0)          # (nH*B, S, d)  head-major batch
        kh = jnp.concatenate(ks, axis=0)
        vh = jnp.concatenate(vs, axis=0)

        s = jnp.einsum("bqd,bkd->bqk", qh, kh, preferred_element_type=f32) * scale + bias
        s = s - jnp.max(s, axis=-1, keepdims=True)                 # softmax ONCE per layer
        p = jnp.exp(s)
        p = p * pl.reciprocal(jnp.sum(p, axis=-1, keepdims=True), approx=True)  # EUP slot
        ctx = jnp.einsum("bqk,bkd->bqd", p, vh, preferred_element_type=f32)     # (nH*B,S,d)

        # merge heads back to (N, H): free leading-dim slices + one lane concat,
        # then ONE K=H output-projection dot (instead of 4 sliced K=d dots).
        merged = jnp.concatenate(
            [ctx[hh * B:(hh + 1) * B].reshape(N, d) for hh in range(nH)], axis=-1)
        attn = jnp.dot(merged.astype(bf16), wo_ref[l],
                       preferred_element_type=f32) + row(sl, R_BO, H)

        h = layer_norm(attn + h, row(sl, R_LN1G, H), row(sl, R_LN1B, H))

        # ---- feed-forward
        ff = jnp.dot(h.astype(bf16), w1_ref[l],
                     preferred_element_type=f32) + row(sl, R_B1, INTER)
        ff = jax.nn.gelu(ff, approximate=True)    # TODO(synk): HF BERT uses erf-GELU
        ff = jnp.dot(ff.astype(bf16), w2_ref[l],
                     preferred_element_type=f32) + row(sl, R_B2, H)
        h = layer_norm(ff + h, row(sl, R_LN2G, H), row(sl, R_LN2B, H))

    # ---- MLM head: dense + gelu + LN; decoder tied to the (untransposed) word table
    hs = hslab_ref[...]                           # (8, 128) packed head small params
    t = jnp.dot(h.astype(bf16), mlmw_ref[...],
                preferred_element_type=f32) + row(hs, R_MLM_B, H)
    t = jax.nn.gelu(t, approximate=True)
    t = layer_norm(t, row(hs, R_MLM_LNG, H), row(hs, R_MLM_LNB, H))
    logits = jax.lax.dot_general(
        t.astype(bf16), wemb_ref[...].astype(bf16), (((1,), (1,)), ((), ())),
        preferred_element_type=f32) + row(hs, R_DEC_B, VOCAB)       # (N, VOCAB) lane-dense
    logits_ref[...] = logits

    # ---- fused masked-LM cross-entropy partial sums (lane-dense (1, VOCAB) row).
    # ignore_index=-100 rows have an all-zero one-hot.  Wrapper does the final
    # scalar reduce and divides by the valid-label count.
    oh = lab1h_ref[...]                                             # (N, VOCAB)
    m = jnp.max(logits, axis=-1, keepdims=True)
    lse = jnp.log(jnp.sum(jnp.exp(logits - m), axis=-1, keepdims=True)) + m
    lossrow_ref[...] = jnp.sum(oh * (lse - logits), axis=0, keepdims=True)  # (1, VOCAB)


# ---------------- parameters (stored pre-stacked / pre-packed for the kernel) ----------------

def init_params(key):
    def nrm(k, shape):
        return 0.02 * jax.random.normal(k, shape, jnp.float32)

    keys = iter(jax.random.split(key, 8 + 8 * N_LAYERS))

    word_emb = nrm(next(keys), (VOCAB, HIDDEN)).at[0].set(0.0)      # padding_idx=0
    position_emb = nrm(next(keys), (MAX_POS, HIDDEN))               # defined, unused in fwd
    token_type_emb = nrm(next(keys), (TYPE_VOCAB, HIDDEN))          # defined, unused in fwd
    pos_tag_emb = nrm(next(keys), (POS_TAG_VOCAB, HIDDEN))
    mlm_w = nrm(next(keys), (HIDDEN, HIDDEN))

    wqkv, wo, w1, w2 = [], [], [], []
    for _ in range(N_LAYERS):
        wq = nrm(next(keys), (HIDDEN, HIDDEN))
        wk = nrm(next(keys), (HIDDEN, HIDDEN))
        wv = nrm(next(keys), (HIDDEN, HIDDEN))
        wqkv.append(jnp.concatenate([wq, wk, wv], axis=1))          # fused QKV weight (H,3H)
        wo.append(nrm(next(keys), (HIDDEN, HIDDEN)))
        w1.append(nrm(next(keys), (HIDDEN, INTER)))
        w2.append(nrm(next(keys), (INTER, HIDDEN)))

    # ---- pack the tiny per-layer / head params into lane-dense (8,128) slabs
    def pack_rows(rows):
        out = jnp.zeros((SLAB_ROWS, SLAB_LANES), jnp.float32)
        for i, r in enumerate(rows):
            r = jnp.asarray(r, jnp.float32).reshape(-1)
            out = out.at[i, : r.shape[0]].set(r)
        return out

    zH = jnp.zeros((HIDDEN,), jnp.float32)
    oH = jnp.ones((HIDDEN,), jnp.float32)
    z3H = jnp.zeros((3 * HIDDEN,), jnp.float32)
    zI = jnp.zeros((INTER,), jnp.float32)
    zV = jnp.zeros((VOCAB,), jnp.float32)

    layer_slab = jnp.stack([
        pack_rows([z3H, zH, oH, zH, zI, zH, oH, zH])  # bqkv, bo, ln1g, ln1b, b1, b2, ln2g, ln2b
        for _ in range(N_LAYERS)])                                   # (L, 8, 128)
    head_slab = pack_rows([zH, oH, zH, zV])                          # mlm_b, mlm_ln_g, mlm_ln_b, dec_b

    return {
        "word_emb": word_emb,                  # f32: gather source + tied decoder table
        "position_emb": position_emb,
        "token_type_emb": token_type_emb,
        "pos_tag_emb": pos_tag_emb,
        "wqkv": jnp.stack(wqkv).astype(jnp.bfloat16),   # (L, H, 3H)
        "wo": jnp.stack(wo).astype(jnp.bfloat16),       # (L, H, H)
        "w1": jnp.stack(w1).astype(jnp.bfloat16),       # (L, H, INTER)
        "w2": jnp.stack(w2).astype(jnp.bfloat16),       # (L, INTER, H)
        "mlm_w": mlm_w.astype(jnp.bfloat16),
        "layer_slab": layer_slab,
        "head_slab": head_slab,
    }


# ---------------- forward pass ----------------

def pos_model_forward(params, input_ids, token_type_ids, attention_mask, labels, pos_ids):
    B, S = input_ids.shape
    N = B * S

    # MyEmbeddings.forward: word_emb(input_ids) + pos_embeddings(pos_ids)
    # (position / token_type embeddings, LayerNorm, dropout not applied to the output)
    h0 = (jnp.take(params["word_emb"], input_ids, axis=0)
          + jnp.take(params["pos_tag_emb"], pos_ids, axis=0)).reshape(N, HIDDEN)

    # additive attention bias, pre-expanded to the head-major (nH*B, 1, S) batch
    addmask = ((1.0 - attention_mask.astype(jnp.float32)) * -1e9)[:, None, :]   # (B,1,S)
    attn_bias = jnp.broadcast_to(addmask[None], (N_HEADS, B, 1, S)).reshape(N_HEADS * B, 1, S)

    # lane-dense one-hot labels; ignore_index=-100 rows become all-zero rows
    lab = labels if labels is not None else jnp.full((B, S), -100, jnp.int32)
    onehot_labels = jax.nn.one_hot(lab.reshape(N), VOCAB, dtype=jnp.float32)

    logits2d, lossrow = pl.pallas_call(
        fused_forward_kernel,
        out_shape=(jax.ShapeDtypeStruct((N, VOCAB), jnp.float32),
                   jax.ShapeDtypeStruct((1, VOCAB), jnp.float32)),
    )(h0, attn_bias, onehot_labels,
      params["word_emb"],
      params["wqkv"], params["wo"], params["w1"], params["w2"], params["mlm_w"],
      params["layer_slab"], params["head_slab"])

    logits = logits2d.reshape(B, S, VOCAB)
    if labels is None:
        return None, logits
    num = jnp.sum(lossrow)                                           # sum of per-token NLL
    den = jnp.sum((labels != -100).astype(jnp.float32))              # PyTorch mean semantics
    return num / den, logits


# ---------------- driver ----------------

if __name__ == "__main__":
    key = jax.random.PRNGKey(0)
    k_par, k_ids, k_pos, k_lab = jax.random.split(key, 4)

    params = init_params(k_par)

    input_ids = jax.random.randint(k_ids, (BATCH, SEQ), 1, VOCAB, dtype=jnp.int32)
    pos_ids = jax.random.randint(k_pos, (BATCH, SEQ), 0, POS_TAG_VOCAB, dtype=jnp.int32)
    token_type_ids = jnp.zeros((BATCH, SEQ), jnp.int32)
    attention_mask = jnp.ones((BATCH, SEQ), jnp.int32).at[1, SEQ - 2:].set(0)
    labels = jax.random.randint(k_lab, (BATCH, SEQ), 0, VOCAB, dtype=jnp.int32)
    labels = labels.at[0, 0].set(-100)  # exercise ignore_index=-100

    fwd = jax.jit(pos_model_forward)
    loss, logits = fwd(params, input_ids, token_type_ids, attention_mask, labels, pos_ids)
    jax.block_until_ready((loss, logits))

    assert logits.shape == (BATCH, SEQ, VOCAB)
    assert loss.shape == () and bool(jnp.isfinite(loss))
    print("KERNEL_OK")
</pallas_src>

<mosaic_0001>
module attributes {stable_mosaic.version = 11 : i64} {
  func.func @fused_forward_kernel(%arg0: memref<16x32xf32, #tpu.memory_space<vmem>>, %arg1: memref<8x1x8xf32, #tpu.memory_space<vmem>>, %arg2: memref<16x128xf32, #tpu.memory_space<vmem>>, %arg3: memref<128x32xf32, #tpu.memory_space<vmem>>, %arg4: memref<2x32x96xbf16, #tpu.memory_space<vmem>>, %arg5: memref<2x32x32xbf16, #tpu.memory_space<vmem>>, %arg6: memref<2x32x128xbf16, #tpu.memory_space<vmem>>, %arg7: memref<2x128x32xbf16, #tpu.memory_space<vmem>>, %arg8: memref<32x32xbf16, #tpu.memory_space<vmem>>, %arg9: memref<2x8x128xf32, #tpu.memory_space<vmem>>, %arg10: memref<8x128xf32, #tpu.memory_space<vmem>>, %arg11: memref<16x128xf32, #tpu.memory_space<vmem>>, %arg12: memref<1x128xf32, #tpu.memory_space<vmem>>) attributes {dimension_semantics = [], scalar_prefetch = 0 : i64, scratch_operands = 0 : i64, tpu.core_type = #tpu.core_type<tc>} {
    %c0 = arith.constant 0 : index
    %c0_0 = arith.constant 0 : index
    %0 = vector.load %arg0[%c0, %c0_0] : memref<16x32xf32, #tpu.memory_space<vmem>>, vector<16x32xf32>
    %c0_1 = arith.constant 0 : index
    %c0_2 = arith.constant 0 : index
    %c0_3 = arith.constant 0 : index
    %1 = vector.load %arg1[%c0_1, %c0_2, %c0_3] : memref<8x1x8xf32, #tpu.memory_space<vmem>>, vector<8x1x8xf32>
    %c0_4 = arith.constant 0 : index
    %c0_5 = arith.constant 0 : index
    %c0_6 = arith.constant 0 : index
    %2 = vector.load %arg9[%c0_4, %c0_5, %c0_6] : memref<2x8x128xf32, #tpu.memory_space<vmem>>, vector<1x8x128xf32>
    %3 = vector.shape_cast %2 : vector<1x8x128xf32> to vector<8x128xf32>
    %4 = arith.truncf %0 : vector<16x32xf32> to vector<16x32xbf16>
    %c0_7 = arith.constant 0 : index
    %c0_8 = arith.constant 0 : index
    %c0_9 = arith.constant 0 : index
    %5 = vector.load %arg4[%c0_7, %c0_8, %c0_9] : memref<2x32x96xbf16, #tpu.memory_space<vmem>>, vector<1x32x96xbf16>
    %6 = vector.shape_cast %5 : vector<1x32x96xbf16> to vector<32x96xbf16>
    %cst = arith.constant dense<0.000000e+00> : vector<16x96xf32>
    %7 = tpu.matmul %4, %6, %cst {dimension_numbers = #tpu.dot_dimension_numbers<[1], [0], [0], [1], [0, 0, 1, 1], [], []>} : vector<16x32xbf16>, vector<32x96xbf16>, vector<16x96xf32> -> vector<16x96xf32>
    %8 = vector.extract_strided_slice %3 {offsets = [0, 0], sizes = [1, 96], strides = [1, 1]} : vector<8x128xf32> to vector<1x96xf32>
    %9 = vector.broadcast %8 : vector<1x96xf32> to vector<16x96xf32>
    %10 = arith.addf %7, %9 : vector<16x96xf32>
    %11 = vector.extract_strided_slice %10 {offsets = [0, 0], sizes = [16, 8], strides = [1, 1]} : vector<16x96xf32> to vector<16x8xf32>
    %12 = vector.shape_cast %11 : vector<16x8xf32> to vector<2x8x8xf32>
    %13 = vector.extract_strided_slice %10 {offsets = [0, 32], sizes = [16, 8], strides = [1, 1]} : vector<16x96xf32> to vector<16x8xf32>
    %14 = vector.shape_cast %13 : vector<16x8xf32> to vector<2x8x8xf32>
    %15 = vector.extract_strided_slice %10 {offsets = [0, 64], sizes = [16, 8], strides = [1, 1]} : vector<16x96xf32> to vector<16x8xf32>
    %16 = vector.shape_cast %15 : vector<16x8xf32> to vector<2x8x8xf32>
    %17 = vector.extract_strided_slice %10 {offsets = [0, 8], sizes = [16, 8], strides = [1, 1]} : vector<16x96xf32> to vector<16x8xf32>
    %18 = vector.shape_cast %17 : vector<16x8xf32> to vector<2x8x8xf32>
    %19 = vector.extract_strided_slice %10 {offsets = [0, 40], sizes = [16, 8], strides = [1, 1]} : vector<16x96xf32> to vector<16x8xf32>
    %20 = vector.shape_cast %19 : vector<16x8xf32> to vector<2x8x8xf32>
    %21 = vector.extract_strided_slice %10 {offsets = [0, 72], sizes = [16, 8], strides = [1, 1]} : vector<16x96xf32> to vector<16x8xf32>
    %22 = vector.shape_cast %21 : vector<16x8xf32> to vector<2x8x8xf32>
    %23 = vector.extract_strided_slice %10 {offsets = [0, 16], sizes = [16, 8], strides = [1, 1]} : vector<16x96xf32> to vector<16x8xf32>
    %24 = vector.shape_cast %23 : vector<16x8xf32> to vector<2x8x8xf32>
    %25 = vector.extract_strided_slice %10 {offsets = [0, 48], sizes = [16, 8], strides = [1, 1]} : vector<16x96xf32> to vector<16x8xf32>
    %26 = vector.shape_cast %25 : vector<16x8xf32> to vector<2x8x8xf32>
    %27 = vector.extract_strided_slice %10 {offsets = [0, 80], sizes = [16, 8], strides = [1, 1]} : vector<16x96xf32> to vector<16x8xf32>
    %28 = vector.shape_cast %27 : vector<16x8xf32> to vector<2x8x8xf32>
    %29 = vector.extract_strided_slice %10 {offsets = [0, 24], sizes = [16, 8], strides = [1, 1]} : vector<16x96xf32> to vector<16x8xf32>
    %30 = vector.shape_cast %29 : vector<16x8xf32> to vector<2x8x8xf32>
    %31 = vector.extract_strided_slice %10 {offsets = [0, 56], sizes = [16, 8], strides = [1, 1]} : vector<16x96xf32> to vector<16x8xf32>
    %32 = vector.shape_cast %31 : vector<16x8xf32> to vector<2x8x8xf32>
    %33 = vector.extract_strided_slice %10 {offsets = [0, 88], sizes = [16, 8], strides = [1, 1]} : vector<16x96xf32> to vector<16x8xf32>
    %34 = vector.shape_cast %33 : vector<16x8xf32> to vector<2x8x8xf32>
    %35 = tpu.concatenate %12, %18, %24, %30 in 0 : vector<2x8x8xf32>, vector<2x8x8xf32>, vector<2x8x8xf32>, vector<2x8x8xf32> -> vector<8x8x8xf32>
    %36 = tpu.concatenate %14, %20, %26, %32 in 0 : vector<2x8x8xf32>, vector<2x8x8xf32>, vector<2x8x8xf32>, vector<2x8x8xf32> -> vector<8x8x8xf32>
    %37 = tpu.concatenate %16, %22, %28, %34 in 0 : vector<2x8x8xf32>, vector<2x8x8xf32>, vector<2x8x8xf32>, vector<2x8x8xf32> -> vector<8x8x8xf32>
    "tpu.trace_start"() <{level = 10 : i32, message = "bqd,bkd->bqk"}> : () -> ()
    %cst_10 = arith.constant dense<0.000000e+00> : vector<8x8x8xf32>
    %38 = tpu.matmul %35, %36, %cst_10 {dimension_numbers = #tpu.dot_dimension_numbers<[2], [2], [1], [1], [0, 0, 0, 1, 1, 1], [0], [0]>} : vector<8x8x8xf32>, vector<8x8x8xf32>, vector<8x8x8xf32> -> vector<8x8x8xf32>
    "tpu.trace_stop"() : () -> ()
    %cst_11 = arith.constant 0.353553385 : f32
    %39 = vector.broadcast %cst_11 : f32 to vector<8x8x8xf32>
    %40 = arith.mulf %38, %39 : vector<8x8x8xf32>
    %41 = vector.broadcast %1 : vector<8x1x8xf32> to vector<8x8x8xf32>
    %42 = arith.addf %40, %41 : vector<8x8x8xf32>
    %cst_12 = arith.constant dense<0xFF800000> : vector<8x8xf32>
    %43 = vector.multi_reduction <maximumf>, %42, %cst_12 [2] : vector<8x8x8xf32> to vector<8x8xf32>
    %44 = vector.shape_cast %43 : vector<8x8xf32> to vector<8x8x1xf32>
    %45 = vector.broadcast %44 : vector<8x8x1xf32> to vector<8x8x8xf32>
    %46 = arith.subf %42, %45 : vector<8x8x8xf32>
    %47 = math.exp %46 : vector<8x8x8xf32>
    %cst_13 = arith.constant dense<0.000000e+00> : vector<8x8xf32>
    %48 = vector.multi_reduction <add>, %47, %cst_13 [2] : vector<8x8x8xf32> to vector<8x8xf32>
    %49 = vector.shape_cast %48 : vector<8x8xf32> to vector<8x8x1xf32>
    %50 = tpu.reciprocal %49 {approx = true} : vector<8x8x1xf32> -> vector<8x8x1xf32>
    %51 = vector.broadcast %50 : vector<8x8x1xf32> to vector<8x8x8xf32>
    %52 = arith.mulf %47, %51 : vector<8x8x8xf32>
    "tpu.trace_start"() <{level = 10 : i32, message = "bqk,bkd->bqd"}> : () -> ()
    %cst_14 = arith.constant dense<0.000000e+00> : vector<8x8x8xf32>
    %53 = tpu.matmul %52, %37, %cst_14 {dimension_numbers = #tpu.dot_dimension_numbers<[2], [1], [1], [2], [0, 0, 0, 1, 1, 2], [0], [0]>} : vector<8x8x8xf32>, vector<8x8x8xf32>, vector<8x8x8xf32> -> vector<8x8x8xf32>
    "tpu.trace_stop"() : () -> ()
    %54 = vector.extract_strided_slice %53 {offsets = [0, 0, 0], sizes = [2, 8, 8], strides = [1, 1, 1]} : vector<8x8x8xf32> to vector<2x8x8xf32>
    %55 = vector.shape_cast %54 : vector<2x8x8xf32> to vector<16x8xf32>
    %56 = vector.extract_strided_slice %53 {offsets = [2, 0, 0], sizes = [2, 8, 8], strides = [1, 1, 1]} : vector<8x8x8xf32> to vector<2x8x8xf32>
    %57 = vector.shape_cast %56 : vector<2x8x8xf32> to vector<16x8xf32>
    %58 = vector.extract_strided_slice %53 {offsets = [4, 0, 0], sizes = [2, 8, 8], strides = [1, 1, 1]} : vector<8x8x8xf32> to vector<2x8x8xf32>
    %59 = vector.shape_cast %58 : vector<2x8x8xf32> to vector<16x8xf32>
    %60 = vector.extract_strided_slice %53 {offsets = [6, 0, 0], sizes = [2, 8, 8], strides = [1, 1, 1]} : vector<8x8x8xf32> to vector<2x8x8xf32>
    %61 = vector.shape_cast %60 : vector<2x8x8xf32> to vector<16x8xf32>
    %62 = tpu.concatenate %55, %57, %59, %61 in 1 : vector<16x8xf32>, vector<16x8xf32>, vector<16x8xf32>, vector<16x8xf32> -> vector<16x32xf32>
    %63 = arith.truncf %62 : vector<16x32xf32> to vector<16x32xbf16>
    %c0_15 = arith.constant 0 : index
    %c0_16 = arith.constant 0 : index
    %c0_17 = arith.constant 0 : index
    %64 = vector.load %arg5[%c0_15, %c0_16, %c0_17] : memref<2x32x32xbf16, #tpu.memory_space<vmem>>, vector<1x32x32xbf16>
    %65 = vector.shape_cast %64 : vector<1x32x32xbf16> to vector<32x32xbf16>
    %cst_18 = arith.constant dense<0.000000e+00> : vector<16x32xf32>
    %66 = tpu.matmul %63, %65, %cst_18 {dimension_numbers = #tpu.dot_dimension_numbers<[1], [0], [0], [1], [0, 0, 1, 1], [], []>} : vector<16x32xbf16>, vector<32x32xbf16>, vector<16x32xf32> -> vector<16x32xf32>
    %67 = vector.extract_strided_slice %3 {offsets = [1, 0], sizes = [1, 32], strides = [1, 1]} : vector<8x128xf32> to vector<1x32xf32>
    %68 = vector.broadcast %67 : vector<1x32xf32> to vector<16x32xf32>
    %69 = arith.addf %66, %68 : vector<16x32xf32>
    %70 = arith.addf %69, %0 : vector<16x32xf32>
    %71 = vector.extract_strided_slice %3 {offsets = [2, 0], sizes = [1, 32], strides = [1, 1]} : vector<8x128xf32> to vector<1x32xf32>
    %72 = vector.extract_strided_slice %3 {offsets = [3, 0], sizes = [1, 32], strides = [1, 1]} : vector<8x128xf32> to vector<1x32xf32>
    %cst_19 = arith.constant dense<0.000000e+00> : vector<16xf32>
    %73 = vector.multi_reduction <add>, %70, %cst_19 [1] : vector<16x32xf32> to vector<16xf32>
    %74 = vector.shape_cast %73 : vector<16xf32> to vector<16x1xf32>
    %cst_20 = arith.constant 3.200000e+01 : f32
    %75 = vector.broadcast %cst_20 : f32 to vector<16x1xf32>
    %76 = arith.divf %74, %75 : vector<16x1xf32>
    %77 = vector.broadcast %76 : vector<16x1xf32> to vector<16x32xf32>
    %78 = arith.subf %70, %77 : vector<16x32xf32>
    %79 = arith.mulf %78, %78 : vector<16x32xf32>
    %cst_21 = arith.constant dense<0.000000e+00> : vector<16xf32>
    %80 = vector.multi_reduction <add>, %79, %cst_21 [1] : vector<16x32xf32> to vector<16xf32>
    %81 = vector.shape_cast %80 : vector<16xf32> to vector<16x1xf32>
    %cst_22 = arith.constant 3.200000e+01 : f32
    %82 = vector.broadcast %cst_22 : f32 to vector<16x1xf32>
    %83 = arith.divf %81, %82 : vector<16x1xf32>
    %84 = vector.broadcast %76 : vector<16x1xf32> to vector<16x32xf32>
    %85 = arith.subf %70, %84 : vector<16x32xf32>
    %cst_23 = arith.constant 9.99999996E-13 : f32
    %86 = vector.broadcast %cst_23 : f32 to vector<16x1xf32>
    %87 = arith.addf %83, %86 : vector<16x1xf32>
    %88 = math.rsqrt %87 : vector<16x1xf32>
    %89 = vector.broadcast %88 : vector<16x1xf32> to vector<16x32xf32>
    %90 = arith.mulf %85, %89 : vector<16x32xf32>
    %91 = vector.broadcast %71 : vector<1x32xf32> to vector<16x32xf32>
    %92 = arith.mulf %90, %91 : vector<16x32xf32>
    %93 = vector.broadcast %72 : vector<1x32xf32> to vector<16x32xf32>
    %94 = arith.addf %92, %93 : vector<16x32xf32>
    %95 = arith.truncf %94 : vector<16x32xf32> to vector<16x32xbf16>
    %c0_24 = arith.constant 0 : index
    %c0_25 = arith.constant 0 : index
    %c0_26 = arith.constant 0 : index
    %96 = vector.load %arg6[%c0_24, %c0_25, %c0_26] : memref<2x32x128xbf16, #tpu.memory_space<vmem>>, vector<1x32x128xbf16>
    %97 = vector.shape_cast %96 : vector<1x32x128xbf16> to vector<32x128xbf16>
    %cst_27 = arith.constant dense<0.000000e+00> : vector<16x128xf32>
    %98 = tpu.matmul %95, %97, %cst_27 {dimension_numbers = #tpu.dot_dimension_numbers<[1], [0], [0], [1], [0, 0, 1, 1], [], []>} : vector<16x32xbf16>, vector<32x128xbf16>, vector<16x128xf32> -> vector<16x128xf32>
    %99 = vector.extract_strided_slice %3 {offsets = [4, 0], sizes = [1, 128], strides = [1, 1]} : vector<8x128xf32> to vector<1x128xf32>
    %100 = vector.broadcast %99 : vector<1x128xf32> to vector<16x128xf32>
    %101 = arith.addf %98, %100 : vector<16x128xf32>
    %102 = arith.mulf %101, %101 : vector<16x128xf32>
    %103 = arith.mulf %101, %102 : vector<16x128xf32>
    %cst_28 = arith.constant 4.471500e-02 : f32
    %104 = vector.broadcast %cst_28 : f32 to vector<16x128xf32>
    %105 = arith.mulf %104, %103 : vector<16x128xf32>
    %106 = arith.addf %101, %105 : vector<16x128xf32>
    %cst_29 = arith.constant 0.797884583 : f32
    %107 = vector.broadcast %cst_29 : f32 to vector<16x128xf32>
    %108 = arith.mulf %107, %106 : vector<16x128xf32>
    %109 = math.tanh %108 : vector<16x128xf32>
    %cst_30 = arith.constant 1.000000e+00 : f32
    %110 = vector.broadcast %cst_30 : f32 to vector<16x128xf32>
    %111 = arith.addf %110, %109 : vector<16x128xf32>
    %cst_31 = arith.constant 5.000000e-01 : f32
    %112 = vector.broadcast %cst_31 : f32 to vector<16x128xf32>
    %113 = arith.mulf %112, %111 : vector<16x128xf32>
    %114 = arith.mulf %101, %113 : vector<16x128xf32>
    %115 = arith.truncf %114 : vector<16x128xf32> to vector<16x128xbf16>
    %c0_32 = arith.constant 0 : index
    %c0_33 = arith.constant 0 : index
    %c0_34 = arith.constant 0 : index
    %116 = vector.load %arg7[%c0_32, %c0_33, %c0_34] : memref<2x128x32xbf16, #tpu.memory_space<vmem>>, vector<1x128x32xbf16>
    %117 = vector.shape_cast %116 : vector<1x128x32xbf16> to vector<128x32xbf16>
    %cst_35 = arith.constant dense<0.000000e+00> : vector<16x32xf32>
    %118 = tpu.matmul %115, %117, %cst_35 {dimension_numbers = #tpu.dot_dimension_numbers<[1], [0], [0], [1], [0, 0, 1, 1], [], []>} : vector<16x128xbf16>, vector<128x32xbf16>, vector<16x32xf32> -> vector<16x32xf32>
    %119 = vector.extract_strided_slice %3 {offsets = [5, 0], sizes = [1, 32], strides = [1, 1]} : vector<8x128xf32> to vector<1x32xf32>
    %120 = vector.broadcast %119 : vector<1x32xf32> to vector<16x32xf32>
    %121 = arith.addf %118, %120 : vector<16x32xf32>
    %122 = arith.addf %121, %94 : vector<16x32xf32>
    %123 = vector.extract_strided_slice %3 {offsets = [6, 0], sizes = [1, 32], strides = [1, 1]} : vector<8x128xf32> to vector<1x32xf32>
    %124 = vector.extract_strided_slice %3 {offsets = [7, 0], sizes = [1, 32], strides = [1, 1]} : vector<8x128xf32> to vector<1x32xf32>
    %cst_36 = arith.constant dense<0.000000e+00> : vector<16xf32>
    %125 = vector.multi_reduction <add>, %122, %cst_36 [1] : vector<16x32xf32> to vector<16xf32>
    %126 = vector.shape_cast %125 : vector<16xf32> to vector<16x1xf32>
    %cst_37 = arith.constant 3.200000e+01 : f32
    %127 = vector.broadcast %cst_37 : f32 to vector<16x1xf32>
    %128 = arith.divf %126, %127 : vector<16x1xf32>
    %129 = vector.broadcast %128 : vector<16x1xf32> to vector<16x32xf32>
    %130 = arith.subf %122, %129 : vector<16x32xf32>
    %131 = arith.mulf %130, %130 : vector<16x32xf32>
    %cst_38 = arith.constant dense<0.000000e+00> : vector<16xf32>
    %132 = vector.multi_reduction <add>, %131, %cst_38 [1] : vector<16x32xf32> to vector<16xf32>
    %133 = vector.shape_cast %132 : vector<16xf32> to vector<16x1xf32>
    %cst_39 = arith.constant 3.200000e+01 : f32
    %134 = vector.broadcast %cst_39 : f32 to vector<16x1xf32>
    %135 = arith.divf %133, %134 : vector<16x1xf32>
    %136 = vector.broadcast %128 : vector<16x1xf32> to vector<16x32xf32>
    %137 = arith.subf %122, %136 : vector<16x32xf32>
    %cst_40 = arith.constant 9.99999996E-13 : f32
    %138 = vector.broadcast %cst_40 : f32 to vector<16x1xf32>
    %139 = arith.addf %135, %138 : vector<16x1xf32>
    %140 = math.rsqrt %139 : vector<16x1xf32>
    %141 = vector.broadcast %140 : vector<16x1xf32> to vector<16x32xf32>
    %142 = arith.mulf %137, %141 : vector<16x32xf32>
    %143 = vector.broadcast %123 : vector<1x32xf32> to vector<16x32xf32>
    %144 = arith.mulf %142, %143 : vector<16x32xf32>
    %145 = vector.broadcast %124 : vector<1x32xf32> to vector<16x32xf32>
    %146 = arith.addf %144, %145 : vector<16x32xf32>
    %c1 = arith.constant 1 : index
    %c0_41 = arith.constant 0 : index
    %c0_42 = arith.constant 0 : index
    %147 = vector.load %arg9[%c1, %c0_41, %c0_42] : memref<2x8x128xf32, #tpu.memory_space<vmem>>, vector<1x8x128xf32>
    %148 = vector.shape_cast %147 : vector<1x8x128xf32> to vector<8x128xf32>
    %149 = arith.truncf %146 : vector<16x32xf32> to vector<16x32xbf16>
    %c1_43 = arith.constant 1 : index
    %c0_44 = arith.constant 0 : index
    %c0_45 = arith.constant 0 : index
    %150 = vector.load %arg4[%c1_43, %c0_44, %c0_45] : memref<2x32x96xbf16, #tpu.memory_space<vmem>>, vector<1x32x96xbf16>
    %151 = vector.shape_cast %150 : vector<1x32x96xbf16> to vector<32x96xbf16>
    %cst_46 = arith.constant dense<0.000000e+00> : vector<16x96xf32>
    %152 = tpu.matmul %149, %151, %cst_46 {dimension_numbers = #tpu.dot_dimension_numbers<[1], [0], [0], [1], [0, 0, 1, 1], [], []>} : vector<16x32xbf16>, vector<32x96xbf16>, vector<16x96xf32> -> vector<16x96xf32>
    %153 = vector.extract_strided_slice %148 {offsets = [0, 0], sizes = [1, 96], strides = [1, 1]} : vector<8x128xf32> to vector<1x96xf32>
    %154 = vector.broadcast %153 : vector<1x96xf32> to vector<16x96xf32>
    %155 = arith.addf %152, %154 : vector<16x96xf32>
    %156 = vector.extract_strided_slice %155 {offsets = [0, 0], sizes = [16, 8], strides = [1, 1]} : vector<16x96xf32> to vector<16x8xf32>
    %157 = vector.shape_cast %156 : vector<16x8xf32> to vector<2x8x8xf32>
    %158 = vector.extract_strided_slice %155 {offsets = [0, 32], sizes = [16, 8], strides = [1, 1]} : vector<16x96xf32> to vector<16x8xf32>
    %159 = vector.shape_cast %158 : vector<16x8xf32> to vector<2x8x8xf32>
    %160 = vector.extract_strided_slice %155 {offsets = [0, 64], sizes = [16, 8], strides = [1, 1]} : vector<16x96xf32> to vector<16x8xf32>
    %161 = vector.shape_cast %160 : vector<16x8xf32> to vector<2x8x8xf32>
    %162 = vector.extract_strided_slice %155 {offsets = [0, 8], sizes = [16, 8], strides = [1, 1]} : vector<16x96xf32> to vector<16x8xf32>
    %163 = vector.shape_cast %162 : vector<16x8xf32> to vector<2x8x8xf32>
    %164 = vector.extract_strided_slice %155 {offsets = [0, 40], sizes = [16, 8], strides = [1, 1]} : vector<16x96xf32> to vector<16x8xf32>
    %165 = vector.shape_cast %164 : vector<16x8xf32> to vector<2x8x8xf32>
    %166 = vector.extract_strided_slice %155 {offsets = [0, 72], sizes = [16, 8], strides = [1, 1]} : vector<16x96xf32> to vector<16x8xf32>
    %167 = vector.shape_cast %166 : vector<16x8xf32> to vector<2x8x8xf32>
    %168 = vector.extract_strided_slice %155 {offsets = [0, 16], sizes = [16, 8], strides = [1, 1]} : vector<16x96xf32> to vector<16x8xf32>
    %169 = vector.shape_cast %168 : vector<16x8xf32> to vector<2x8x8xf32>
    %170 = vector.extract_strided_slice %155 {offsets = [0, 48], sizes = [16, 8], strides = [1, 1]} : vector<16x96xf32> to vector<16x8xf32>
    %171 = vector.shape_cast %170 : vector<16x8xf32> to vector<2x8x8xf32>
    %172 = vector.extract_strided_slice %155 {offsets = [0, 80], sizes = [16, 8], strides = [1, 1]} : vector<16x96xf32> to vector<16x8xf32>
    %173 = vector.shape_cast %172 : vector<16x8xf32> to vector<2x8x8xf32>
    %174 = vector.extract_strided_slice %155 {offsets = [0, 24], sizes = [16, 8], strides = [1, 1]} : vector<16x96xf32> to vector<16x8xf32>
    %175 = vector.shape_cast %174 : vector<16x8xf32> to vector<2x8x8xf32>
    %176 = vector.extract_strided_slice %155 {offsets = [0, 56], sizes = [16, 8], strides = [1, 1]} : vector<16x96xf32> to vector<16x8xf32>
    %177 = vector.shape_cast %176 : vector<16x8xf32> to vector<2x8x8xf32>
    %178 = vector.extract_strided_slice %155 {offsets = [0, 88], sizes = [16, 8], strides = [1, 1]} : vector<16x96xf32> to vector<16x8xf32>
    %179 = vector.shape_cast %178 : vector<16x8xf32> to vector<2x8x8xf32>
    %180 = tpu.concatenate %157, %163, %169, %175 in 0 : vector<2x8x8xf32>, vector<2x8x8xf32>, vector<2x8x8xf32>, vector<2x8x8xf32> -> vector<8x8x8xf32>
    %181 = tpu.concatenate %159, %165, %171, %177 in 0 : vector<2x8x8xf32>, vector<2x8x8xf32>, vector<2x8x8xf32>, vector<2x8x8xf32> -> vector<8x8x8xf32>
    %182 = tpu.concatenate %161, %167, %173, %179 in 0 : vector<2x8x8xf32>, vector<2x8x8xf32>, vector<2x8x8xf32>, vector<2x8x8xf32> -> vector<8x8x8xf32>
    "tpu.trace_start"() <{level = 10 : i32, message = "bqd,bkd->bqk"}> : () -> ()
    %cst_47 = arith.constant dense<0.000000e+00> : vector<8x8x8xf32>
    %183 = tpu.matmul %180, %181, %cst_47 {dimension_numbers = #tpu.dot_dimension_numbers<[2], [2], [1], [1], [0, 0, 0, 1, 1, 1], [0], [0]>} : vector<8x8x8xf32>, vector<8x8x8xf32>, vector<8x8x8xf32> -> vector<8x8x8xf32>
    "tpu.trace_stop"() : () -> ()
    %cst_48 = arith.constant 0.353553385 : f32
    %184 = vector.broadcast %cst_48 : f32 to vector<8x8x8xf32>
    %185 = arith.mulf %183, %184 : vector<8x8x8xf32>
    %186 = vector.broadcast %1 : vector<8x1x8xf32> to vector<8x8x8xf32>
    %187 = arith.addf %185, %186 : vector<8x8x8xf32>
    %cst_49 = arith.constant dense<0xFF800000> : vector<8x8xf32>
    %188 = vector.multi_reduction <maximumf>, %187, %cst_49 [2] : vector<8x8x8xf32> to vector<8x8xf32>
    %189 = vector.shape_cast %188 : vector<8x8xf32> to vector<8x8x1xf32>
    %190 = vector.broadcast %189 : vector<8x8x1xf32> to vector<8x8x8xf32>
    %191 = arith.subf %187, %190 : vector<8x8x8xf32>
    %192 = math.exp %191 : vector<8x8x8xf32>
    %cst_50 = arith.constant dense<0.000000e+00> : vector<8x8xf32>
    %193 = vector.multi_reduction <add>, %192, %cst_50 [2] : vector<8x8x8xf32> to vector<8x8xf32>
    %194 = vector.shape_cast %193 : vector<8x8xf32> to vector<8x8x1xf32>
    %195 = tpu.reciprocal %194 {approx = true} : vector<8x8x1xf32> -> vector<8x8x1xf32>
    %196 = vector.broadcast %195 : vector<8x8x1xf32> to vector<8x8x8xf32>
    %197 = arith.mulf %192, %196 : vector<8x8x8xf32>
    "tpu.trace_start"() <{level = 10 : i32, message = "bqk,bkd->bqd"}> : () -> ()
    %cst_51 = arith.constant dense<0.000000e+00> : vector<8x8x8xf32>
    %198 = tpu.matmul %197, %182, %cst_51 {dimension_numbers = #tpu.dot_dimension_numbers<[2], [1], [1], [2], [0, 0, 0, 1, 1, 2], [0], [0]>} : vector<8x8x8xf32>, vector<8x8x8xf32>, vector<8x8x8xf32> -> vector<8x8x8xf32>
    "tpu.trace_stop"() : () -> ()
    %199 = vector.extract_strided_slice %198 {offsets = [0, 0, 0], sizes = [2, 8, 8], strides = [1, 1, 1]} : vector<8x8x8xf32> to vector<2x8x8xf32>
    %200 = vector.shape_cast %199 : vector<2x8x8xf32> to vector<16x8xf32>
    %201 = vector.extract_strided_slice %198 {offsets = [2, 0, 0], sizes = [2, 8, 8], strides = [1, 1, 1]} : vector<8x8x8xf32> to vector<2x8x8xf32>
    %202 = vector.shape_cast %201 : vector<2x8x8xf32> to vector<16x8xf32>
    %203 = vector.extract_strided_slice %198 {offsets = [4, 0, 0], sizes = [2, 8, 8], strides = [1, 1, 1]} : vector<8x8x8xf32> to vector<2x8x8xf32>
    %204 = vector.shape_cast %203 : vector<2x8x8xf32> to vector<16x8xf32>
    %205 = vector.extract_strided_slice %198 {offsets = [6, 0, 0], sizes = [2, 8, 8], strides = [1, 1, 1]} : vector<8x8x8xf32> to vector<2x8x8xf32>
    %206 = vector.shape_cast %205 : vector<2x8x8xf32> to vector<16x8xf32>
    %207 = tpu.concatenate %200, %202, %204, %206 in 1 : vector<16x8xf32>, vector<16x8xf32>, vector<16x8xf32>, vector<16x8xf32> -> vector<16x32xf32>
    %208 = arith.truncf %207 : vector<16x32xf32> to vector<16x32xbf16>
    %c1_52 = arith.constant 1 : index
    %c0_53 = arith.constant 0 : index
    %c0_54 = arith.constant 0 : index
    %209 = vector.load %arg5[%c1_52, %c0_53, %c0_54] : memref<2x32x32xbf16, #tpu.memory_space<vmem>>, vector<1x32x32xbf16>
    %210 = vector.shape_cast %209 : vector<1x32x32xbf16> to vector<32x32xbf16>
    %cst_55 = arith.constant dense<0.000000e+00> : vector<16x32xf32>
    %211 = tpu.matmul %208, %210, %cst_55 {dimension_numbers = #tpu.dot_dimension_numbers<[1], [0], [0], [1], [0, 0, 1, 1], [], []>} : vector<16x32xbf16>, vector<32x32xbf16>, vector<16x32xf32> -> vector<16x32xf32>
    %212 = vector.extract_strided_slice %148 {offsets = [1, 0], sizes = [1, 32], strides = [1, 1]} : vector<8x128xf32> to vector<1x32xf32>
    %213 = vector.broadcast %212 : vector<1x32xf32> to vector<16x32xf32>
    %214 = arith.addf %211, %213 : vector<16x32xf32>
    %215 = arith.addf %214, %146 : vector<16x32xf32>
    %216 = vector.extract_strided_slice %148 {offsets = [2, 0], sizes = [1, 32], strides = [1, 1]} : vector<8x128xf32> to vector<1x32xf32>
    %217 = vector.extract_strided_slice %148 {offsets = [3, 0], sizes = [1, 32], strides = [1, 1]} : vector<8x128xf32> to vector<1x32xf32>
    %cst_56 = arith.constant dense<0.000000e+00> : vector<16xf32>
    %218 = vector.multi_reduction <add>, %215, %cst_56 [1] : vector<16x32xf32> to vector<16xf32>
    %219 = vector.shape_cast %218 : vector<16xf32> to vector<16x1xf32>
    %cst_57 = arith.constant 3.200000e+01 : f32
    %220 = vector.broadcast %cst_57 : f32 to vector<16x1xf32>
    %221 = arith.divf %219, %220 : vector<16x1xf32>
    %222 = vector.broadcast %221 : vector<16x1xf32> to vector<16x32xf32>
    %223 = arith.subf %215, %222 : vector<16x32xf32>
    %224 = arith.mulf %223, %223 : vector<16x32xf32>
    %cst_58 = arith.constant dense<0.000000e+00> : vector<16xf32>
    %225 = vector.multi_reduction <add>, %224, %cst_58 [1] : vector<16x32xf32> to vector<16xf32>
    %226 = vector.shape_cast %225 : vector<16xf32> to vector<16x1xf32>
    %cst_59 = arith.constant 3.200000e+01 : f32
    %227 = vector.broadcast %cst_59 : f32 to vector<16x1xf32>
    %228 = arith.divf %226, %227 : vector<16x1xf32>
    %229 = vector.broadcast %221 : vector<16x1xf32> to vector<16x32xf32>
    %230 = arith.subf %215, %229 : vector<16x32xf32>
    %cst_60 = arith.constant 9.99999996E-13 : f32
    %231 = vector.broadcast %cst_60 : f32 to vector<16x1xf32>
    %232 = arith.addf %228, %231 : vector<16x1xf32>
    %233 = math.rsqrt %232 : vector<16x1xf32>
    %234 = vector.broadcast %233 : vector<16x1xf32> to vector<16x32xf32>
    %235 = arith.mulf %230, %234 : vector<16x32xf32>
    %236 = vector.broadcast %216 : vector<1x32xf32> to vector<16x32xf32>
    %237 = arith.mulf %235, %236 : vector<16x32xf32>
    %238 = vector.broadcast %217 : vector<1x32xf32> to vector<16x32xf32>
    %239 = arith.addf %237, %238 : vector<16x32xf32>
    %240 = arith.truncf %239 : vector<16x32xf32> to vector<16x32xbf16>
    %c1_61 = arith.constant 1 : index
    %c0_62 = arith.constant 0 : index
    %c0_63 = arith.constant 0 : index
    %241 = vector.load %arg6[%c1_61, %c0_62, %c0_63] : memref<2x32x128xbf16, #tpu.memory_space<vmem>>, vector<1x32x128xbf16>
    %242 = vector.shape_cast %241 : vector<1x32x128xbf16> to vector<32x128xbf16>
    %cst_64 = arith.constant dense<0.000000e+00> : vector<16x128xf32>
    %243 = tpu.matmul %240, %242, %cst_64 {dimension_numbers = #tpu.dot_dimension_numbers<[1], [0], [0], [1], [0, 0, 1, 1], [], []>} : vector<16x32xbf16>, vector<32x128xbf16>, vector<16x128xf32> -> vector<16x128xf32>
    %244 = vector.extract_strided_slice %148 {offsets = [4, 0], sizes = [1, 128], strides = [1, 1]} : vector<8x128xf32> to vector<1x128xf32>
    %245 = vector.broadcast %244 : vector<1x128xf32> to vector<16x128xf32>
    %246 = arith.addf %243, %245 : vector<16x128xf32>
    %247 = arith.mulf %246, %246 : vector<16x128xf32>
    %248 = arith.mulf %246, %247 : vector<16x128xf32>
    %cst_65 = arith.constant 4.471500e-02 : f32
    %249 = vector.broadcast %cst_65 : f32 to vector<16x128xf32>
    %250 = arith.mulf %249, %248 : vector<16x128xf32>
    %251 = arith.addf %246, %250 : vector<16x128xf32>
    %cst_66 = arith.constant 0.797884583 : f32
    %252 = vector.broadcast %cst_66 : f32 to vector<16x128xf32>
    %253 = arith.mulf %252, %251 : vector<16x128xf32>
    %254 = math.tanh %253 : vector<16x128xf32>
    %cst_67 = arith.constant 1.000000e+00 : f32
    %255 = vector.broadcast %cst_67 : f32 to vector<16x128xf32>
    %256 = arith.addf %255, %254 : vector<16x128xf32>
    %cst_68 = arith.constant 5.000000e-01 : f32
    %257 = vector.broadcast %cst_68 : f32 to vector<16x128xf32>
    %258 = arith.mulf %257, %256 : vector<16x128xf32>
    %259 = arith.mulf %246, %258 : vector<16x128xf32>
    %260 = arith.truncf %259 : vector<16x128xf32> to vector<16x128xbf16>
    %c1_69 = arith.constant 1 : index
    %c0_70 = arith.constant 0 : index
    %c0_71 = arith.constant 0 : index
    %261 = vector.load %arg7[%c1_69, %c0_70, %c0_71] : memref<2x128x32xbf16, #tpu.memory_space<vmem>>, vector<1x128x32xbf16>
    %262 = vector.shape_cast %261 : vector<1x128x32xbf16> to vector<128x32xbf16>
    %cst_72 = arith.constant dense<0.000000e+00> : vector<16x32xf32>
    %263 = tpu.matmul %260, %262, %cst_72 {dimension_numbers = #tpu.dot_dimension_numbers<[1], [0], [0], [1], [0, 0, 1, 1], [], []>} : vector<16x128xbf16>, vector<128x32xbf16>, vector<16x32xf32> -> vector<16x32xf32>
    %264 = vector.extract_strided_slice %148 {offsets = [5, 0], sizes = [1, 32], strides = [1, 1]} : vector<8x128xf32> to vector<1x32xf32>
    %265 = vector.broadcast %264 : vector<1x32xf32> to vector<16x32xf32>
    %266 = arith.addf %263, %265 : vector<16x32xf32>
    %267 = arith.addf %266, %239 : vector<16x32xf32>
    %268 = vector.extract_strided_slice %148 {offsets = [6, 0], sizes = [1, 32], strides = [1, 1]} : vector<8x128xf32> to vector<1x32xf32>
    %269 = vector.extract_strided_slice %148 {offsets = [7, 0], sizes = [1, 32], strides = [1, 1]} : vector<8x128xf32> to vector<1x32xf32>
    %cst_73 = arith.constant dense<0.000000e+00> : vector<16xf32>
    %270 = vector.multi_reduction <add>, %267, %cst_73 [1] : vector<16x32xf32> to vector<16xf32>
    %271 = vector.shape_cast %270 : vector<16xf32> to vector<16x1xf32>
    %cst_74 = arith.constant 3.200000e+01 : f32
    %272 = vector.broadcast %cst_74 : f32 to vector<16x1xf32>
    %273 = arith.divf %271, %272 : vector<16x1xf32>
    %274 = vector.broadcast %273 : vector<16x1xf32> to vector<16x32xf32>
    %275 = arith.subf %267, %274 : vector<16x32xf32>
    %276 = arith.mulf %275, %275 : vector<16x32xf32>
    %cst_75 = arith.constant dense<0.000000e+00> : vector<16xf32>
    %277 = vector.multi_reduction <add>, %276, %cst_75 [1] : vector<16x32xf32> to vector<16xf32>
    %278 = vector.shape_cast %277 : vector<16xf32> to vector<16x1xf32>
    %cst_76 = arith.constant 3.200000e+01 : f32
    %279 = vector.broadcast %cst_76 : f32 to vector<16x1xf32>
    %280 = arith.divf %278, %279 : vector<16x1xf32>
    %281 = vector.broadcast %273 : vector<16x1xf32> to vector<16x32xf32>
    %282 = arith.subf %267, %281 : vector<16x32xf32>
    %cst_77 = arith.constant 9.99999996E-13 : f32
    %283 = vector.broadcast %cst_77 : f32 to vector<16x1xf32>
    %284 = arith.addf %280, %283 : vector<16x1xf32>
    %285 = math.rsqrt %284 : vector<16x1xf32>
    %286 = vector.broadcast %285 : vector<16x1xf32> to vector<16x32xf32>
    %287 = arith.mulf %282, %286 : vector<16x32xf32>
    %288 = vector.broadcast %268 : vector<1x32xf32> to vector<16x32xf32>
    %289 = arith.mulf %287, %288 : vector<16x32xf32>
    %290 = vector.broadcast %269 : vector<1x32xf32> to vector<16x32xf32>
    %291 = arith.addf %289, %290 : vector<16x32xf32>
    %c0_78 = arith.constant 0 : index
    %c0_79 = arith.constant 0 : index
    %292 = vector.load %arg10[%c0_78, %c0_79] : memref<8x128xf32, #tpu.memory_space<vmem>>, vector<8x128xf32>
    %293 = arith.truncf %291 : vector<16x32xf32> to vector<16x32xbf16>
    %c0_80 = arith.constant 0 : index
    %c0_81 = arith.constant 0 : index
    %294 = vector.load %arg8[%c0_80, %c0_81] : memref<32x32xbf16, #tpu.memory_space<vmem>>, vector<32x32xbf16>
    %cst_82 = arith.constant dense<0.000000e+00> : vector<16x32xf32>
    %295 = tpu.matmul %293, %294, %cst_82 {dimension_numbers = #tpu.dot_dimension_numbers<[1], [0], [0], [1], [0, 0, 1, 1], [], []>} : vector<16x32xbf16>, vector<32x32xbf16>, vector<16x32xf32> -> vector<16x32xf32>
    %296 = vector.extract_strided_slice %292 {offsets = [0, 0], sizes = [1, 32], strides = [1, 1]} : vector<8x128xf32> to vector<1x32xf32>
    %297 = vector.broadcast %296 : vector<1x32xf32> to vector<16x32xf32>
    %298 = arith.addf %295, %297 : vector<16x32xf32>
    %299 = arith.mulf %298, %298 : vector<16x32xf32>
    %300 = arith.mulf %298, %299 : vector<16x32xf32>
    %cst_83 = arith.constant 4.471500e-02 : f32
    %301 = vector.broadcast %cst_83 : f32 to vector<16x32xf32>
    %302 = arith.mulf %301, %300 : vector<16x32xf32>
    %303 = arith.addf %298, %302 : vector<16x32xf32>
    %cst_84 = arith.constant 0.797884583 : f32
    %304 = vector.broadcast %cst_84 : f32 to vector<16x32xf32>
    %305 = arith.mulf %304, %303 : vector<16x32xf32>
    %306 = math.tanh %305 : vector<16x32xf32>
    %cst_85 = arith.constant 1.000000e+00 : f32
    %307 = vector.broadcast %cst_85 : f32 to vector<16x32xf32>
    %308 = arith.addf %307, %306 : vector<16x32xf32>
    %cst_86 = arith.constant 5.000000e-01 : f32
    %309 = vector.broadcast %cst_86 : f32 to vector<16x32xf32>
    %310 = arith.mulf %309, %308 : vector<16x32xf32>
    %311 = arith.mulf %298, %310 : vector<16x32xf32>
    %312 = vector.extract_strided_slice %292 {offsets = [1, 0], sizes = [1, 32], strides = [1, 1]} : vector<8x128xf32> to vector<1x32xf32>
    %313 = vector.extract_strided_slice %292 {offsets = [2, 0], sizes = [1, 32], strides = [1, 1]} : vector<8x128xf32> to vector<1x32xf32>
    %cst_87 = arith.constant dense<0.000000e+00> : vector<16xf32>
    %314 = vector.multi_reduction <add>, %311, %cst_87 [1] : vector<16x32xf32> to vector<16xf32>
    %315 = vector.shape_cast %314 : vector<16xf32> to vector<16x1xf32>
    %cst_88 = arith.constant 3.200000e+01 : f32
    %316 = vector.broadcast %cst_88 : f32 to vector<16x1xf32>
    %317 = arith.divf %315, %316 : vector<16x1xf32>
    %318 = vector.broadcast %317 : vector<16x1xf32> to vector<16x32xf32>
    %319 = arith.subf %311, %318 : vector<16x32xf32>
    %320 = arith.mulf %319, %319 : vector<16x32xf32>
    %cst_89 = arith.constant dense<0.000000e+00> : vector<16xf32>
    %321 = vector.multi_reduction <add>, %320, %cst_89 [1] : vector<16x32xf32> to vector<16xf32>
    %322 = vector.shape_cast %321 : vector<16xf32> to vector<16x1xf32>
    %cst_90 = arith.constant 3.200000e+01 : f32
    %323 = vector.broadcast %cst_90 : f32 to vector<16x1xf32>
    %324 = arith.divf %322, %323 : vector<16x1xf32>
    %325 = vector.broadcast %317 : vector<16x1xf32> to vector<16x32xf32>
    %326 = arith.subf %311, %325 : vector<16x32xf32>
    %cst_91 = arith.constant 9.99999996E-13 : f32
    %327 = vector.broadcast %cst_91 : f32 to vector<16x1xf32>
    %328 = arith.addf %324, %327 : vector<16x1xf32>
    %329 = math.rsqrt %328 : vector<16x1xf32>
    %330 = vector.broadcast %329 : vector<16x1xf32> to vector<16x32xf32>
    %331 = arith.mulf %326, %330 : vector<16x32xf32>
    %332 = vector.broadcast %312 : vector<1x32xf32> to vector<16x32xf32>
    %333 = arith.mulf %331, %332 : vector<16x32xf32>
    %334 = vector.broadcast %313 : vector<1x32xf32> to vector<16x32xf32>
    %335 = arith.addf %333, %334 : vector<16x32xf32>
    %336 = arith.truncf %335 : vector<16x32xf32> to vector<16x32xbf16>
    %c0_92 = arith.constant 0 : index
    %c0_93 = arith.constant 0 : index
    %337 = vector.load %arg3[%c0_92, %c0_93] : memref<128x32xf32, #tpu.memory_space<vmem>>, vector<128x32xf32>
    %338 = arith.truncf %337 : vector<128x32xf32> to vector<128x32xbf16>
    %cst_94 = arith.constant dense<0.000000e+00> : vector<16x128xf32>
    %339 = tpu.matmul %336, %338, %cst_94 {dimension_numbers = #tpu.dot_dimension_numbers<[1], [1], [0], [0], [0, 0, 1, 0], [], []>} : vector<16x32xbf16>, vector<128x32xbf16>, vector<16x128xf32> -> vector<16x128xf32>
    %340 = vector.extract_strided_slice %292 {offsets = [3, 0], sizes = [1, 128], strides = [1, 1]} : vector<8x128xf32> to vector<1x128xf32>
    %341 = vector.broadcast %340 : vector<1x128xf32> to vector<16x128xf32>
    %342 = arith.addf %339, %341 : vector<16x128xf32>
    %c0_95 = arith.constant 0 : index
    %c0_96 = arith.constant 0 : index
    %343 = vector.load %arg11[%c0_95, %c0_96] : memref<16x128xf32, #tpu.memory_space<vmem>>, vector<16x128xf32>
    tpu.vector_store %arg11[%c0_95, %c0_96], %342 {strides = array<i32>} : memref<16x128xf32, #tpu.memory_space<vmem>>, vector<16x128xf32>,
    %c0_97 = arith.constant 0 : index
    %c0_98 = arith.constant 0 : index
    %344 = vector.load %arg2[%c0_97, %c0_98] : memref<16x128xf32, #tpu.memory_space<vmem>>, vector<16x128xf32>
    %cst_99 = arith.constant dense<0xFF800000> : vector<16xf32>
    %345 = vector.multi_reduction <maximumf>, %342, %cst_99 [1] : vector<16x128xf32> to vector<16xf32>
    %346 = vector.shape_cast %345 : vector<16xf32> to vector<16x1xf32>
    %347 = vector.broadcast %346 : vector<16x1xf32> to vector<16x128xf32>
    %348 = arith.subf %342, %347 : vector<16x128xf32>
    %349 = math.exp %348 : vector<16x128xf32>
    %cst_100 = arith.constant dense<0.000000e+00> : vector<16xf32>
    %350 = vector.multi_reduction <add>, %349, %cst_100 [1] : vector<16x128xf32> to vector<16xf32>
    %351 = vector.shape_cast %350 : vector<16xf32> to vector<16x1xf32>
    %352 = math.log %351 : vector<16x1xf32>
    %353 = arith.addf %352, %346 : vector<16x1xf32>
    %354 = vector.broadcast %353 : vector<16x1xf32> to vector<16x128xf32>
    %355 = arith.subf %354, %342 : vector<16x128xf32>
    %356 = arith.mulf %344, %355 : vector<16x128xf32>
    %cst_101 = arith.constant dense<0.000000e+00> : vector<128xf32>
    %357 = vector.multi_reduction <add>, %356, %cst_101 [0] : vector<16x128xf32> to vector<128xf32>
    %358 = vector.shape_cast %357 : vector<128xf32> to vector<1x128xf32>
    %c0_102 = arith.constant 0 : index
    %c0_103 = arith.constant 0 : index
    %359 = vector.load %arg12[%c0_102, %c0_103] : memref<1x128xf32, #tpu.memory_space<vmem>>, vector<1x128xf32>
    tpu.vector_store %arg12[%c0_102, %c0_103], %358 {strides = array<i32>} : memref<1x128xf32, #tpu.memory_space<vmem>>, vector<1x128xf32>,
    return
  }
}

</mosaic_0001>

<bundles_post_ra>
// kernel: pos_model_forward.1
= control target key start
LH: loop header
LB: loop body
LE: loop exit
PB: predicated region body
PF: predicated region fallthrough
CT: control target
= control target key end

     0   :  { %v4630_v1 = vmov 0.0   ;;  %vm4631_vm0 = vmmov 0   ;;  %vm74_vm1 = vcmask 261120   ;;  %s5489_s0 = inlined_call_operand.vmem [shape: f32[16,32], index: 0, kind: input, shape index: {}]   ;;  %s5490_s1 = inlined_call_operand.vmem [shape: f32[8,1,8], index: 1, kind: input, shape index: {}]   ;;  %s5491_s2 = inlined_call_operand.vmem [shape: f32[16,128], index: 2, kind: input, shape index: {}]   ;;  %s5492_s3 = inlined_call_operand.vmem [shape: f32[128,32], index: 3, kind: input, shape index: {}]   ;;  %s5493_s4 = inlined_call_operand.vmem [shape: bf16[2,32,96], index: 4, kind: input, shape index: {}]   ;;  %s5494_s5 = inlined_call_operand.vmem [shape: bf16[2,32,32], index: 5, kind: input, shape index: {}]   ;;  %s5495_s6 = inlined_call_operand.vmem [shape: bf16[2,32,128], index: 6, kind: input, shape index: {}]   ;;  %s5496_s7 = inlined_call_operand.vmem [shape: bf16[2,128,32], index: 7, kind: input, shape index: {}]   ;;  %s5497_s8 = inlined_call_operand.vmem [shape: bf16[32,32], index: 8, kind: input, shape index: {}]   ;;  %s5498_s9 = inlined_call_operand.vmem [shape: f32[2,8,128], index: 9, kind: input, shape index: {}]   ;;  %s5499_s10 = inlined_call_operand.vmem [shape: f32[8,128], index: 10, kind: input, shape index: {}]   ;;  %s5500_s11 = inlined_call_operand.hbm [shape: f32[16,128], index: 11, kind: output, shape index: {0}]   ;;  %s5501_s12 = inlined_call_operand.vmem [shape: f32[1,128], index: 12, kind: output, shape index: {1}]  }
   0x1   :  { %v4474_v0 = vld [vmem:[%s5493_s4 + $0x8] sm:$0xff]   ;;  %4156 = vmatprep.subr.bf16.mxu1 %v4630_v1  ;;  %4179 = vmatprep.subr.mxu0 %v4630_v1  ;;  %v4475_v2 = vld [vmem:[%s5493_s4] sm:$0xff]  }
   0x2   :  { %4157 = vmatpush3.bf16.msra.mxu1 %v4474_v0  ;;  %4160 = vmatprep.mubr.msk.bf16.mxu1 %vm4631_vm0, %v4630_v1  ;;  %v4720_v3 = vld [vmem:[%s5489_s0] sm:$0xff]  ;;  %v4725_v4 = vld [vmem:[%s5489_s0 + $0x8] sm:$0xff] }
   0x3   :  { %4158 = vmatprep.subr.bf16.mxu1 %v4630_v1  ;;  %4181 = vmatprep.mubr.msk.f32.mxu0 %vm4631_vm0, %v4630_v1  ;;  %v53_v5 = vpack.c.bf16 %v4725_v4, %v4720_v3 }
   0x6   :  { %4159 = vmatpush3.bf16.msra.mxu1 %v4475_v2 }
   0x7   :  { %4164 = vmatprep.subr.mxu1 %v4630_v1 }
   0x9   :  { %4161 = vmatmul.mubr.msk.bf16.vlgmr.msra.gmra.mxu1 %vm74_vm1, %v53_v5 }
   0xa   :  { %4166 = vmatprep.mubr.msk.f32.mxu1 %vm4631_vm0, %v4630_v1 }
   0xb   :  { %18 = vsyncpa [#allocation3], 0  ;;  %v58_v6 = vlaneseq  ;;  %v4744_v9 = vld [vmem:[%s5498_s9] sm:$0xff]  ;;  %s4632_s30 = smov 112   ;;  %s4633_s13 = smov 120   ;;  %vm135_vm2 = vcmask 64512  }
   0xc   :  { %s4634_s14 = smov 104   ;;  %s4635_s15 = smov 96   ;;  %v4843_v32 = vld [vmem:[%s5490_s1] ss:$0 sm:$0xff]  ;;  %v4851_v37 = vld [vmem:[%s5490_s1 + $0x1] ss:$0 sm:$0xff] }
   0xd   :  { %v4736_v7 = vshrl.u32 %v58_v6, 7  ;;  %v4860_v44 = vld [vmem:[%s5490_s1 + $0x2] ss:$0 sm:$0xff]  ;;  %v4866_v50 = vld [vmem:[%s5490_s1 + $0x3] ss:$0 sm:$0xff]  ;;  %s4636_s17 = smov 64  }
   0xe   :  { %v4871_v51 = vld [vmem:[%s5490_s1 + $0x4] ss:$0 sm:$0xff]  ;;  %v4879_v61 = vld [vmem:[%s5490_s1 + $0x5] ss:$0 sm:$0xff]  ;;  %v4884_v62 = vld [vmem:[%s5490_s1 + $0x6] ss:$0 sm:$0xff] }
   0xf   :  { %v4739_v8 = vsub.s32 0, %v4736_v7  ;;  %s4637_s21 = smov 8   ;;  %s4638_s22 = smov 16   ;;  %vm1528_vm3 = vcmask 130048   ;;  %vm1531_vm4 = vcmask 195584  }
  0x10   :  { %s4639_s23 = smov 24  }
  0x11   :  { %v61_v10 = vrot.slane %v4744_v9, %v4739_v8 }
  0xc9   :  { %v112_v11 = vpop.f32.mrf.mxu1 }
  0xca   :  { %v4748_v12 = vadd.f32 %v112_v11, %v61_v10 }
  0xcb   :  { %v4162_v13 = vpop.f32.mrf.mxu1 }
  0xcc   :  { %125 = vrot.lane.b32.xlu1 %v4748_v12, %s4632_s30  ;;  %121 = vrot.lane.b32.xlu0 %v4748_v12, %s4633_s13 }
  0xcd   :  { %v115_v14 = vpop.f32.mrf.mxu1 }
  0xce   :  { %v4754_v15 = vadd.f32 %v115_v14, %v61_v10 }
  0xcf   :  { %v4163_v16 = vpop.f32.mrf.mxu1 }
  0xd0   :  { %127 = vrot.lane.b32.xlu1 %v4754_v15, %s4632_s30  ;;  %123 = vrot.lane.b32.xlu0 %v4754_v15, %s4633_s13  ;;  %v4893_v16 = vld [vmem:[%s5490_s1 + $0x7] ss:$0 sm:$0xff] }
  0xd4   :  { %131 = vrot.lane.b32.xlu1 %v4754_v15, %s4634_s14  ;;  %129 = vrot.lane.b32.xlu0 %v4748_v12, %s4634_s14 }
  0xd8   :  { %210 = vrot.lane.b32.xlu1 %v4754_v15, %s4635_s15  ;;  %133 = vrot.lane.b32.xlu0 %v4748_v12, %s4635_s15 }
 0x13e   :  { %v4768_v17 = vpop.permute.xlu1 %125  ;;  %v4770_v18 = vpop.permute.xlu0 %121 }
 0x13f   :  { %286 = vrot.lane.b32.xlu0 %v4770_v18, %s4635_s15 }
 0x142   :  { %v4774_v19 = vpop.permute.xlu1 %127  ;;  %v4776_v20 = vpop.permute.xlu0 %123 }
 0x143   :  { %438 = vrot.lane.b32.xlu0 %v4768_v17, %s4635_s15  ;;  %362 = vrot.lane.b32.xlu1 %v4776_v20, %s4635_s15 }
 0x146   :  { %v4782_v21 = vpop.permute.xlu0 %129  ;;  %v4788_v22 = vpop.permute.xlu1 %131 }
 0x147   :  { %514 = vrot.lane.b32.xlu1 %v4774_v19, %s4635_s15  ;;  %590 = vrot.lane.b32.xlu0 %v4782_v21, %s4635_s15 }
 0x14a   :  { %v134_v23 = vpop.permute.xlu0 %133  ;;  %v211_v24 = vpop.permute.xlu1 %210 }
 0x14b   :  { %666 = vrot.lane.b32.xlu1 %v4788_v22, %s4635_s15  ;;  %4165 = vmatpush3.xpose.msk.msra.mxu1 %vm135_vm2, %v134_v23 }
 0x14c   :  { %4169 = vmatprep.subr.mxu1 %v4630_v1 }
 0x14e   :  { %4167 = vmatmul.mubr.msk.f32.vlgmr.msra.gmra.mxu1 %vm135_vm2, %v4748_v12 }
 0x14f   :  { %4170 = vmatpush3.xpose.msk.msra.mxu1 %vm135_vm2, %v211_v24  ;;  %4171 = vmatprep.mubr.msk.f32.mxu1 %vm4631_vm0, %v4630_v1 }
 0x150   :  { %4174 = vmatprep.subr.mxu1 %v4630_v1 }
 0x152   :  { %4172 = vmatmul.mubr.msk.f32.vlgmr.msra.gmra.mxu1 %vm135_vm2, %v4754_v15 }
 0x153   :  { %4176 = vmatprep.mubr.msk.f32.mxu1 %vm4631_vm0, %v4630_v1 }
 0x1b1   :  { %v287_v25 = vpop.permute.xlu0 %286 }
 0x1b2   :  { %4175 = vmatpush3.xpose.msk.msra.mxu1 %vm135_vm2, %v287_v25 }
 0x1b3   :  { %4184 = vmatprep.subr.mxu1 %v4630_v1 }
 0x1b5   :  { %v363_v26 = vpop.permute.xlu1 %362  ;;  %4177 = vmatmul.mubr.msk.f32.vlgmr.msra.gmra.mxu1 %vm135_vm2, %v4770_v18  ;;  %v439_v27 = vpop.permute.xlu0 %438 }
 0x1b6   :  { %4180 = vmatpush3.xpose.msk.msra.mxu0 %vm135_vm2, %v363_v26  ;;  %4185 = vmatpush3.xpose.msk.msra.mxu1 %vm135_vm2, %v439_v27 }
 0x1b7   :  { %4186 = vmatprep.mubr.msk.f32.mxu1 %vm4631_vm0, %v4630_v1  ;;  %4189 = vmatprep.subr.mxu0 %v4630_v1 }
 0x1b8   :  { %4194 = vmatprep.subr.mxu1 %v4630_v1 }
 0x1b9   :  { %4182 = vmatmul.mubr.msk.f32.vlgmr.msra.gmra.mxu0 %vm135_vm2, %v4776_v20  ;;  %v515_v28 = vpop.permute.xlu1 %514  ;;  %4187 = vmatmul.mubr.msk.f32.vlgmr.msra.gmra.mxu1 %vm135_vm2, %v4768_v17  ;;  %v591_v29 = vpop.permute.xlu0 %590 }
 0x1ba   :  { %4190 = vmatpush3.xpose.msk.msra.mxu0 %vm135_vm2, %v515_v28  ;;  %4195 = vmatpush3.xpose.msk.msra.mxu1 %vm135_vm2, %v591_v29 }
 0x1bb   :  { %4191 = vmatprep.mubr.msk.f32.mxu0 %vm4631_vm0, %v4630_v1  ;;  %4196 = vmatprep.mubr.msk.f32.mxu1 %vm4631_vm0, %v4630_v1 }
 0x1bc   :  { %4199 = vmatprep.subr.mxu0 %v4630_v1  ;;  %4204 = vmatprep.subr.mxu1 %v4630_v1 }
 0x1bd   :  { %4192 = vmatmul.mubr.msk.f32.vlgmr.msra.gmra.mxu0 %vm135_vm2, %v4774_v19  ;;  %v667_v30 = vpop.permute.xlu1 %666  ;;  %4197 = vmatmul.mubr.msk.f32.vlgmr.msra.gmra.mxu1 %vm135_vm2, %v4782_v21 }
 0x1be   :  { %4200 = vmatpush3.xpose.msk.msra.mxu0 %vm135_vm2, %v667_v30  ;;  %4201 = vmatprep.mubr.msk.f32.mxu0 %vm4631_vm0, %v4630_v1 }
 0x1bf   :  { %4209 = vmatprep.subr.mxu0 %v4630_v1  ;;  %4206 = vmatprep.mubr.msk.f32.mxu1 %vm4631_vm0, %v4630_v1 }
 0x1c1   :  { %4202 = vmatmul.mubr.msk.f32.vlgmr.msra.gmra.mxu0 %vm135_vm2, %v4788_v22 }
 0x1c2   :  { %4211 = vmatprep.mubr.msk.f32.mxu0 %vm4631_vm0, %v4630_v1 }
 0x20e   :  { %v206_v31 = vpop.f32.mrf.mxu1 }
 0x20f   :  { %v742_v33 = vmul.f32 0.35355338, %v206_v31 }
 0x210   :  { %v4168_v34 = vpop.f32.mrf.mxu1 }
 0x211   :  { %v4846_v35 = vadd.f32 %v4843_v32, %v742_v33 }
 0x212   :  { %v282_v36 = vpop.f32.mrf.mxu1 }
 0x213   :  { %v743_v38 = vmul.f32 0.35355338, %v282_v36  ;;  %v806_v39 = vsel %vm135_vm2, %v4846_v35, -inf }
 0x214   :  { %807 = vmax.xlane.f32.xlu0 %v806_v39  ;;  %v4173_v40 = vpop.f32.mrf.mxu1 }
 0x215   :  { %v799_v41 = vadd.f32 %v4851_v37, %v743_v38 }
 0x217   :  { %v809_v42 = vsel %vm135_vm2, %v799_v41, -inf }
 0x218   :  { %810 = vmax.xlane.f32.xlu1 %v809_v42 }
 0x275   :  { %v358_v43 = vpop.f32.mrf.mxu1 }
 0x276   :  { %v744_v45 = vmul.f32 0.35355338, %v358_v43 }
 0x277   :  { %v4178_v46 = vpop.f32.mrf.mxu1 }
 0x278   :  { %v800_v47 = vadd.f32 %v4860_v44, %v744_v45 }
 0x279   :  { %v434_v48 = vpop.f32.mrf.mxu0  ;;  %v510_v49 = vpop.f32.mrf.mxu1 }
 0x27a   :  { %v745_v52 = vmul.f32 0.35355338, %v434_v48  ;;  %v746_v53 = vmul.f32 0.35355338, %v510_v49  ;;  %v812_v54 = vsel %vm135_vm2, %v800_v47, -inf }
 0x27b   :  { %v4183_v55 = vpop.f32.mrf.mxu0  ;;  %813 = vmax.xlane.f32.xlu0 %v812_v54  ;;  %v4188_v56 = vpop.f32.mrf.mxu1 }
 0x27c   :  { %v801_v57 = vadd.f32 %v4866_v50, %v745_v52  ;;  %v802_v58 = vadd.f32 %v4871_v51, %v746_v53 }
 0x27d   :  { %v586_v59 = vpop.f32.mrf.mxu0  ;;  %v662_v60 = vpop.f32.mrf.mxu1 }
 0x27e   :  { %v747_v63 = vmul.f32 0.35355338, %v586_v59  ;;  %v748_v0 = vmul.f32 0.35355338, %v662_v60  ;;  %v815_v2 = vsel %vm135_vm2, %v801_v57, -inf  ;;  %v818_v5 = vsel %vm135_vm2, %v802_v58, -inf }
 0x27f   :  { %v4193_v6 = vpop.f32.mrf.mxu0  ;;  %816 = vmax.xlane.f32.xlu0 %v815_v2  ;;  %819 = vmax.xlane.f32.xlu1 %v818_v5  ;;  %v4198_v10 = vpop.f32.mrf.mxu1 }
 0x280   :  { %v803_v11 = vadd.f32 %v4879_v61, %v747_v63  ;;  %v804_v13 = vadd.f32 %v4884_v62, %v748_v0 }
 0x281   :  { %v738_v14 = vpop.f32.mrf.mxu0 }
 0x282   :  { %v749_v23 = vmul.f32 0.35355338, %v738_v14  ;;  %v821_v24 = vsel %vm135_vm2, %v803_v11, -inf  ;;  %v824_v25 = vsel %vm135_vm2, %v804_v13, -inf }
 0x283   :  { %v4203_v26 = vpop.f32.mrf.mxu0  ;;  %822 = vmax.xlane.f32.xlu0 %v821_v24  ;;  %825 = vmax.xlane.f32.xlu1 %v824_v25 }
 0x284   :  { %v805_v27 = vadd.f32 %v4893_v16, %v749_v23 }
 0x286   :  { %v827_v28 = vsel %vm135_vm2, %v805_v27, -inf }
 0x287   :  { %828 = vmax.xlane.f32.xlu0 %v827_v28 }
 0x294   :  { %894 = vrot.lane.b32.xlu1 %v4748_v12, %s4636_s17 }
 0x298   :  { %1046 = vrot.lane.b32.xlu1 %v4770_v18, %s4636_s17 }
 0x29c   :  { %1122 = vrot.lane.b32.xlu1 %v4776_v20, %s4636_s17 }
 0x29d   :  { %970 = vrot.lane.b32.xlu0 %v4754_v15, %s4636_s17  ;;  %v808_v31 = vpop.xlane.xlu0 %807 }
 0x29e   :  { %v830_v12 = vsub.f32 %v4846_v35, %v808_v31 }
 0x2a0   :  { %1274 = vrot.lane.b32.xlu1 %v4774_v19, %s4636_s17  ;;  %v838_v34 = vmul.f32 1.442695, %v830_v12 }
 0x2a1   :  { %1198 = vrot.lane.b32.xlu0 %v4768_v17, %s4636_s17  ;;  %v811_v29 = vpop.xlane.xlu1 %810 }
 0x2a2   :  { %v831_v30 = vsub.f32 %v799_v41, %v811_v29 }
 0x2a4   :  { %v840_v33 = vmul.f32 1.442695, %v831_v30 }
 0x2a6   :  { %4504 = vpow2.f32 %v840_v33 }
 0x2a7   :  { %4506 = vpow2.f32 %v838_v34 }
 0x2b3   :  { %v4912_v18 = vpop.eup %4504 }
 0x2b4   :  { %v857_v15 = vsel %vm135_vm2, %v4912_v18, 0.0  ;;  %v4916_v20 = vpop.eup %4506 }
 0x2b5   :  { %v854_v17 = vsel %vm135_vm2, %v4916_v20, 0.0 }
 0x2c0   :  { %858 = vadd.xlane.f32.xlu0 %v857_v15 }
 0x2c4   :  { %855 = vadd.xlane.f32.xlu1 %v854_v17 }
 0x304   :  { %v814_v19 = vpop.xlane.xlu0 %813 }
 0x305   :  { %v832_v36 = vsub.f32 %v800_v47, %v814_v19 }
 0x307   :  { %v842_v38 = vmul.f32 1.442695, %v832_v36 }
 0x308   :  { %v817_v35 = vpop.xlane.xlu0 %816  ;;  %v820_v39 = vpop.xlane.xlu1 %819 }
 0x309   :  { %4508 = vpow2.f32 %v842_v38  ;;  %v833_v40 = vsub.f32 %v801_v57, %v817_v35  ;;  %v834_v41 = vsub.f32 %v802_v58, %v820_v39 }
 0x30b   :  { %v844_v42 = vmul.f32 1.442695, %v833_v40  ;;  %v846_v43 = vmul.f32 1.442695, %v834_v41 }
 0x30c   :  { %v823_v45 = vpop.xlane.xlu0 %822  ;;  %v826_v46 = vpop.xlane.xlu1 %825 }
 0x30d   :  { %4510 = vpow2.f32 %v844_v42  ;;  %v835_v48 = vsub.f32 %v803_v11, %v823_v45  ;;  %v836_v49 = vsub.f32 %v804_v13, %v826_v46 }
 0x30e   :  { %4512 = vpow2.f32 %v846_v43 }
 0x30f   :  { %v848_v52 = vmul.f32 1.442695, %v835_v48  ;;  %v850_v53 = vmul.f32 1.442695, %v836_v49 }
 0x310   :  { %v829_v54 = vpop.xlane.xlu0 %828  ;;  %v895_v55 = vpop.permute.xlu1 %894 }
 0x311   :  { %4514 = vpow2.f32 %v848_v52  ;;  %v837_v47 = vsub.f32 %v805_v27, %v829_v54  ;;  %4205 = vmatpush3.msra.mxu1 %v895_v55 }
 0x312   :  { %4516 = vpow2.f32 %v850_v53  ;;  %4214 = vmatprep.subr.mxu1 %v4630_v1 }
 0x313   :  { %v852_v56 = vmul.f32 1.442695, %v837_v47  ;;  %v4476_v47 = vld [vmem:[%s5494_s5 + $0x8] sm:$0xff]  }
 0x314   :  { %v971_v57 = vpop.permute.xlu0 %970  ;;  %v1047_v23 = vpop.permute.xlu1 %1046 }
 0x315   :  { %4518 = vpow2.f32 %v852_v56  ;;  %4210 = vmatpush3.msra.mxu0 %v971_v57 }
 0x316   :  { %v4509_v58 = vpop.eup %4508  ;;  %4219 = vmatprep.subr.mxu0 %v4630_v1 }
 0x317   :  { %v860_v59 = vsel %vm135_vm2, %v4509_v58, 0.0 }
 0x318   :  { %861 = vadd.xlane.f32.xlu1 %v860_v59  ;;  %v1123_v24 = vpop.permute.xlu1 %1122  ;;  %v1199_v25 = vpop.permute.xlu0 %1198 }
 0x31a   :  { %v4511_v60 = vpop.eup %4510 }
 0x31b   :  { %v4513_v63 = vpop.eup %4512  ;;  %v863_v0 = vsel %vm135_vm2, %v4511_v60, 0.0 }
 0x31c   :  { %864 = vadd.xlane.f32.xlu0 %v863_v0  ;;  %v866_v2 = vsel %vm135_vm2, %v4513_v63, 0.0  ;;  %v1275_v26 = vpop.permute.xlu1 %1274 }
 0x31d   :  { %867 = vadd.xlane.f32.xlu1 %v866_v2 }
 0x31e   :  { %v4515_v5 = vpop.eup %4514 }
 0x31f   :  { %v4925_v6 = vpop.eup %4516  ;;  %v869_v10 = vsel %vm135_vm2, %v4515_v5, 0.0 }
 0x320   :  { %870 = vadd.xlane.f32.xlu0 %v869_v10  ;;  %v872_v11 = vsel %vm135_vm2, %v4925_v6, 0.0 }
 0x321   :  { %873 = vadd.xlane.f32.xlu1 %v872_v11 }
 0x322   :  { %v4930_v13 = vpop.eup %4518 }
 0x323   :  { %v875_v14 = vsel %vm135_vm2, %v4930_v13, 0.0 }
 0x324   :  { %876 = vadd.xlane.f32.xlu0 %v875_v14 }
 0x332   :  { %1426 = vrot.lane.b32.xlu1 %v4788_v22, %s4636_s17 }
 0x33a   :  { %1350 = vrot.lane.b32.xlu0 %v4782_v21, %s4636_s17 }
 0x349   :  { %v859_v27 = vpop.xlane.xlu0 %858 }
 0x34a   :  { %4520 = vrcp.f32 %v859_v27 }
 0x34d   :  { %v856_v28 = vpop.xlane.xlu1 %855 }
 0x34e   :  { %4522 = vrcp.f32 %v856_v28 }
 0x357   :  { %v4521_v29 = vpop.eup %4520 }
 0x358   :  { %v887_v30 = vmul.f32 %v4521_v29, %v4912_v18 }
 0x35a   :  { %4212 = vmatmul.mubr.msk.f32.vlgmr.msra.gmra.mxu0 %vm135_vm2, %v887_v30 }
 0x35b   :  { %v4523_v31 = vpop.eup %4522  ;;  %4220 = vmatpush3.msra.mxu0 %v1123_v24  ;;  %4221 = vmatprep.mubr.msk.f32.mxu0 %vm4631_vm0, %v4630_v1 }
 0x35c   :  { %v886_v21 = vmul.f32 %v4523_v31, %v4916_v20  ;;  %4229 = vmatprep.subr.mxu0 %v4630_v1 }
 0x35e   :  { %4207 = vmatmul.mubr.msk.f32.vlgmr.msra.gmra.mxu1 %vm135_vm2, %v886_v21 }
 0x35f   :  { %4215 = vmatpush3.msra.mxu1 %v1047_v23  ;;  %4216 = vmatprep.mubr.msk.f32.mxu1 %vm4631_vm0, %v4630_v1 }
 0x360   :  { %4224 = vmatprep.subr.mxu1 %v4630_v1 }
 0x3a1   :  { %v862_v22 = vpop.xlane.xlu1 %861 }
 0x3a2   :  { %4524 = vrcp.f32 %v862_v22 }
 0x3a5   :  { %v865_v12 = vpop.xlane.xlu0 %864 }
 0x3a6   :  { %4526 = vrcp.f32 %v865_v12  ;;  %v868_v33 = vpop.xlane.xlu1 %867 }
 0x3a7   :  { %4528 = vrcp.f32 %v868_v33 }
 0x3a9   :  { %v871_v34 = vpop.xlane.xlu0 %870 }
 0x3aa   :  { %4530 = vrcp.f32 %v871_v34  ;;  %v874_v18 = vpop.xlane.xlu1 %873 }
 0x3ab   :  { %4532 = vrcp.f32 %v874_v18 }
 0x3ad   :  { %v877_v15 = vpop.xlane.xlu0 %876 }
 0x3ae   :  { %4534 = vrcp.f32 %v877_v15  ;;  %v1427_v45 = vpop.permute.xlu1 %1426 }
 0x3af   :  { %v4525_v20 = vpop.eup %4524 }
 0x3b0   :  { %v888_v17 = vmul.f32 %v4525_v20, %v4509_v58  ;;  %v4477_v58 = vld [vmem:[%s5494_s5] sm:$0xff]  }
 0x3b1   :  { %v1351_v40 = vpop.permute.xlu0 %1350 }
 0x3b2   :  { %4217 = vmatmul.mubr.msk.f32.vlgmr.msra.gmra.mxu1 %vm135_vm2, %v888_v17  ;;  %v4993_v17 = vsub.s32 1, %v4736_v7 }
 0x3b3   :  { %v4527_v19 = vpop.eup %4526  ;;  %4225 = vmatpush3.msra.mxu1 %v1199_v25  ;;  %4226 = vmatprep.mubr.msk.f32.mxu1 %vm4631_vm0, %v4630_v1 }
 0x3b4   :  { %v4529_v36 = vpop.eup %4528  ;;  %4234 = vmatprep.subr.mxu1 %v4630_v1  ;;  %v889_v38 = vmul.f32 %v4527_v19, %v4511_v60  ;;  %v1542_v19 = vrot.slane %v4744_v9, %v4993_v17 }
 0x3b5   :  { %v890_v35 = vmul.f32 %v4529_v36, %v4513_v63 }
 0x3b6   :  { %4222 = vmatmul.mubr.msk.f32.vlgmr.msra.gmra.mxu0 %vm135_vm2, %v889_v38 }
 0x3b7   :  { %v4531_v39 = vpop.eup %4530  ;;  %4227 = vmatmul.mubr.msk.f32.vlgmr.msra.gmra.mxu1 %vm135_vm2, %v890_v35  ;;  %4230 = vmatpush3.msra.mxu0 %v1275_v26 }
 0x3b8   :  { %v4533_v41 = vpop.eup %4532  ;;  %4235 = vmatpush3.msra.mxu1 %v1351_v40  ;;  %4231 = vmatprep.mubr.msk.f32.mxu0 %vm4631_vm0, %v4630_v1  ;;  %v891_v42 = vmul.f32 %v4531_v39, %v4515_v5 }
 0x3b9   :  { %4236 = vmatprep.mubr.msk.f32.mxu1 %vm4631_vm0, %v4630_v1  ;;  %4239 = vmatprep.subr.mxu0 %v4630_v1  ;;  %v892_v43 = vmul.f32 %v4533_v41, %v4925_v6 }
 0x3ba   :  { %4232 = vmatmul.mubr.msk.f32.vlgmr.msra.gmra.mxu0 %vm135_vm2, %v891_v42  ;;  %4244 = vmatprep.subr.bf16.mxu1 %v4630_v1 }
 0x3bb   :  { %v4535_v46 = vpop.eup %4534  ;;  %4237 = vmatmul.mubr.msk.f32.vlgmr.msra.gmra.mxu1 %vm135_vm2, %v892_v43  ;;  %4240 = vmatpush3.msra.mxu0 %v1427_v45 }
 0x3bc   :  { %4241 = vmatprep.mubr.msk.f32.mxu0 %vm4631_vm0, %v4630_v1  ;;  %v893_v48 = vmul.f32 %v4535_v46, %v4930_v13  ;;  %4248 = vmatprep.mubr.msk.bf16.mxu1 %vm4631_vm0, %v4630_v1 }
 0x3bd   :  { %4280 = vmatprep.subr.bf16.mxu0 %v4630_v1  ;;  %4245 = vmatpush3.bf16.msra.mxu1 %v4476_v47 }
 0x3be   :  { %4242 = vmatmul.mubr.msk.f32.vlgmr.msra.gmra.mxu0 %vm135_vm2, %v893_v48  ;;  %4246 = vmatprep.subr.bf16.mxu1 %v4630_v1 }
 0x3bf   :  { %4284 = vmatprep.mubr.msk.bf16.mxu0 %vm4631_vm0, %v4630_v1 }
 0x3c1   :  { %4247 = vmatpush3.bf16.msra.mxu1 %v4477_v58  ;;  %v4479_v58 = vld [vmem:[%s5495_s6] sm:$0xff]  }
 0x3c2   :  { %4252 = vmatprep.subr.bf16.mxu1 %v4630_v1 }
 0x41a   :  { %v1042_v49 = vpop.f32.mrf.mxu0 }
 0x41c   :  { %v4213_v52 = vpop.f32.mrf.mxu0 }
 0x41e   :  { %v966_v53 = vpop.f32.mrf.mxu1 }
 0x420   :  { %v4208_v54 = vpop.f32.mrf.mxu1 }
 0x472   :  { %v1118_v55 = vpop.f32.mrf.mxu1 }
 0x474   :  { %v4218_v56 = vpop.f32.mrf.mxu1 }
 0x476   :  { %v1194_v57 = vpop.f32.mrf.mxu0 }
 0x477   :  { %v4444_v59 = vpack.i.bf16 %v1194_v57, %v1118_v55  ;;  %v1270_v60 = vpop.f32.mrf.mxu1 }
 0x478   :  { %v4223_v63 = vpop.f32.mrf.mxu0 }
 0x479   :  { %v4228_v0 = vpop.f32.mrf.mxu1  ;;  %4445 = vrot.lane.b32.xlu0 %v4444_v59, %s4637_s21 }
 0x47a   :  { %v1346_v2 = vpop.f32.mrf.mxu0 }
 0x47b   :  { %v4449_v5 = vpack.i.bf16 %v1346_v2, %v1270_v60  ;;  %v1422_v6 = vpop.f32.mrf.mxu1 }
 0x47c   :  { %v4233_v10 = vpop.f32.mrf.mxu0 }
 0x47d   :  { %v4238_v11 = vpop.f32.mrf.mxu1  ;;  %4450 = vrot.lane.b32.xlu1 %v4449_v5, %s4638_s22 }
 0x47e   :  { %v1498_v13 = vpop.f32.mrf.mxu0 }
 0x47f   :  { %v4454_v14 = vpack.i.bf16 %v1498_v13, %v1422_v6  ;;  %v5012_v6 = vsub.s32 2, %v4736_v7 }
 0x480   :  { %v4243_v23 = vpop.f32.mrf.mxu0 }
 0x481   :  { %4455 = vrot.lane.b32.xlu0 %v4454_v14, %s4639_s23  ;;  %v1631_v13 = vrot.slane %v4744_v9, %v5012_v6  ;;  %v5017_v14 = vsub.s32 3, %v4736_v7 }
 0x4eb   :  { %v4446_v24 = vpop.permute.xlu0 %4445 }
 0x4ec   :  { %v4448_v26 = vunpack.i.h.bf16 %v4446_v24  ;;  %v4447_v27 = vunpack.i.l.bf16 %v4446_v24 }
 0x4ee   :  { %v1527_v31 = vsel %vm135_vm2, %v1042_v49, %v4448_v26  ;;  %v1526_v21 = vsel %vm135_vm2, %v966_v53, %v4447_v27  ;;  %v1637_v26 = vrot.slane %v4744_v9, %v5017_v14 }
 0x4ef   :  { %v4451_v25 = vpop.permute.xlu1 %4450 }
 0x4f0   :  { %v4453_v28 = vunpack.i.h.bf16 %v4451_v25  ;;  %v4452_v29 = vunpack.i.l.bf16 %v4451_v25 }
 0x4f2   :  { %v1530_v33 = vsel %vm1528_vm3, %v1527_v31, %v4453_v28  ;;  %v1529_v34 = vsel %vm1528_vm3, %v1526_v21, %v4452_v29  ;;  %v4480_v31 = vld [vmem:[%s5496_s7 + $0x38] sm:$0xff]   ;;  %v4481_v21 = vld [vmem:[%s5496_s7 + $0x30] sm:$0xff]  }
 0x4f3   :  { %v4456_v30 = vpop.permute.xlu0 %4455 }
 0x4f4   :  { %v4458_v22 = vunpack.i.h.bf16 %v4456_v30  ;;  %v4457_v12 = vunpack.i.l.bf16 %v4456_v30 }
 0x4f6   :  { %v1533_v18 = vsel %vm1531_vm4, %v1530_v33, %v4458_v22  ;;  %v1532_v15 = vsel %vm1531_vm4, %v1529_v34, %v4457_v12  ;;  %v4482_v22 = vld [vmem:[%s5496_s7 + $0x28] sm:$0xff]   ;;  %v4483_v12 = vld [vmem:[%s5496_s7 + $0x20] sm:$0xff]   ;;  %v4484_v33 = vld [vmem:[%s5496_s7 + $0x18] sm:$0xff]  }
 0x4f7   :  { %v1534_v20 = vpack.c.bf16 %v1533_v18, %v1532_v15  ;;  %v4485_v34 = vld [vmem:[%s5496_s7 + $0x10] sm:$0xff]   ;;  %v4486_v18 = vld [vmem:[%s5496_s7 + $0x8] sm:$0xff]   ;;  %v4487_v15 = vld [vmem:[%s5496_s7] sm:$0xff]  }
 0x4f9   :  { %4249 = vmatmul.mubr.msk.bf16.vlgmr.msra.gmra.mxu1 %vm74_vm1, %v1534_v20  ;;  %v1647_v20 = vsub.s32 4, %v4736_v7 }
 0x4fa   :  { %4256 = vmatprep.mubr.msk.bf16.mxu1 %vm4631_vm0, %v4630_v1 }
 0x5b9   :  { %v1592_v36 = vpop.f32.mrf.mxu1 }
 0x5ba   :  { %v1593_v38 = vadd.f32 %v1592_v36, %v1542_v19 }
 0x5bb   :  { %v4250_v35 = vpop.f32.mrf.mxu1 }
 0x5bc   :  { %v1599_v39 = vadd.f32 %v1593_v38, %v4720_v3 }
 0x5bd   :  { %v1595_v40 = vpop.f32.mrf.mxu1 }
 0x5be   :  { %v1596_v41 = vadd.f32 %v1595_v40, %v1542_v19  ;;  %v1601_v42 = vsel %vm74_vm1, %v1599_v39, 0.0  ;;  %v1648_v19 = vrot.slane %v4744_v9, %v1647_v20 }
 0x5bf   :  { %1602 = vadd.xlane.f32.xlu1 %v1601_v42  ;;  %v4251_v43 = vpop.f32.mrf.mxu1 }
 0x5c0   :  { %v1600_v45 = vadd.f32 %v1596_v41, %v4725_v4  ;;  %v4478_v4 = vld [vmem:[%s5495_s6 + $0x8] sm:$0xff]  }
 0x5c1   :  { %4253 = vmatpush3.bf16.msra.mxu1 %v4478_v4 }
 0x5c2   :  { %v1604_v46 = vsel %vm74_vm1, %v1600_v45, 0.0  ;;  %4254 = vmatprep.subr.bf16.mxu1 %v4630_v1 }
 0x5c3   :  { %1605 = vadd.xlane.f32.xlu0 %v1604_v46 }
 0x5c5   :  { %4255 = vmatpush3.bf16.msra.mxu1 %v4479_v58 }
 0x5c6   :  { %4260 = vmatprep.subr.bf16.mxu1 %v4630_v1 }
 0x648   :  { %v1603_v48 = vpop.xlane.xlu1 %1602 }
 0x649   :  { %v1608_v49 = vmul.f32 0.03125, %v1603_v48 }
 0x64b   :  { %v1610_v52 = vsub.f32 %v1599_v39, %v1608_v49 }
 0x64c   :  { %v1606_v53 = vpop.xlane.xlu0 %1605 }
 0x64d   :  { %v1609_v54 = vmul.f32 0.03125, %v1606_v53  ;;  %v1612_v55 = vmul.f32 %v1610_v52, %v1610_v52 }
 0x64f   :  { %v1611_v47 = vsub.f32 %v1600_v45, %v1609_v54  ;;  %v1614_v3 = vsel %vm74_vm1, %v1612_v55, 0.0 }
 0x650   :  { %1615 = vadd.xlane.f32.xlu0 %v1614_v3 }
 0x651   :  { %v1613_v56 = vmul.f32 %v1611_v47, %v1611_v47 }
 0x653   :  { %v1617_v57 = vsel %vm74_vm1, %v1613_v56, 0.0 }
 0x654   :  { %1618 = vadd.xlane.f32.xlu1 %v1617_v57 }
 0x6d9   :  { %v1616_v59 = vpop.xlane.xlu0 %1615 }
 0x6da   :  { %v1620_v60 = vmul.f32 0.03125, %v1616_v59 }
 0x6dc   :  { %v1622_v63 = vadd.f32 1e-12, %v1620_v60 }
 0x6dd   :  { %v1619_v0 = vpop.xlane.xlu1 %1618 }
 0x6de   :  { %4536 = vrsqrt.f32 %v1622_v63  ;;  %v1621_v2 = vmul.f32 0.03125, %v1619_v0  ;;  %v1742_v0 = vsub.s32 5, %v4736_v7 }
 0x6e0   :  { %v1623_v5 = vadd.f32 1e-12, %v1621_v2  ;;  %v1743_v2 = vrot.slane %v4744_v9, %v1742_v0 }
 0x6e2   :  { %4538 = vrsqrt.f32 %v1623_v5 }
 0x6eb   :  { %v4537_v10 = vpop.eup %4536 }
 0x6ec   :  { %v1626_v11 = vmul.f32 %v4537_v10, %v1610_v52 }
 0x6ee   :  { %v1632_v25 = vmul.f32 %v1631_v13, %v1626_v11 }
 0x6ef   :  { %v4539_v23 = vpop.eup %4538 }
 0x6f0   :  { %v1627_v24 = vmul.f32 %v4539_v23, %v1611_v47  ;;  %v5021_v28 = vadd.f32 %v1637_v26, %v1632_v25 }
 0x6f2   :  { %v1633_v27 = vmul.f32 %v1631_v13, %v1627_v24 }
 0x6f4   :  { %v5023_v29 = vadd.f32 %v1637_v26, %v1633_v27 }
 0x6f6   :  { %v1640_v30 = vpack.c.bf16 %v5023_v29, %v5021_v28 }
 0x6f8   :  { %4257 = vmatmul.mubr.msk.bf16.vlgmr.msra.gmra.mxu1 %vm74_vm1, %v1640_v30 }
 0x6f9   :  { %4276 = vmatprep.mubr.msk.bf16.mxu1 %vm4631_vm0, %v4630_v1  ;;  %4261 = vmatpush3.bf16.msra.mxu1 %v4480_v31 }
 0x6fa   :  { %4262 = vmatprep.subr.bf16.mxu1 %v4630_v1 }
 0x6fd   :  { %4263 = vmatpush3.bf16.msra.mxu1 %v4481_v21 }
 0x6fe   :  { %4264 = vmatprep.subr.bf16.mxu1 %v4630_v1 }
 0x701   :  { %4265 = vmatpush3.bf16.msra.mxu1 %v4482_v22 }
 0x702   :  { %4266 = vmatprep.subr.bf16.mxu1 %v4630_v1 }
 0x705   :  { %4267 = vmatpush3.bf16.msra.mxu1 %v4483_v12 }
 0x706   :  { %4268 = vmatprep.subr.bf16.mxu1 %v4630_v1 }
 0x709   :  { %4269 = vmatpush3.bf16.msra.mxu1 %v4484_v33 }
 0x70a   :  { %4270 = vmatprep.subr.bf16.mxu1 %v4630_v1 }
 0x70d   :  { %4271 = vmatpush3.bf16.msra.mxu1 %v4485_v34 }
 0x70e   :  { %4272 = vmatprep.subr.bf16.mxu1 %v4630_v1 }
 0x711   :  { %4273 = vmatpush3.bf16.msra.mxu1 %v4486_v18 }
 0x712   :  { %4274 = vmatprep.subr.bf16.mxu1 %v4630_v1 }
 0x715   :  { %4275 = vmatpush3.bf16.msra.mxu1 %v4487_v15 }
 0x716   :  { %4318 = vmatprep.subr.mxu1 %v4630_v1 }
 0x7b8   :  { %v1698_v36 = vpop.f32.mrf.mxu1 }
 0x7b9   :  { %v1699_v38 = vadd.f32 %v1698_v36, %v1648_v19  ;;  %v4489_v36 = vld [vmem:[%s5493_s4 + $0x10] sm:$0xff]  }
 0x7ba   :  { %v4258_v35 = vpop.f32.mrf.mxu1 }
 0x7bb   :  { %v1705_v39 = vmul.f32 %v1699_v38, %v1699_v38 }
 0x7bc   :  { %v1701_v40 = vpop.f32.mrf.mxu1 }
 0x7bd   :  { %v1707_v41 = vmul.f32 %v1705_v39, %v1699_v38  ;;  %v1702_v42 = vadd.f32 %v1701_v40, %v1648_v19 }
 0x7be   :  { %v4259_v43 = vpop.f32.mrf.mxu1 }
 0x7bf   :  { %v1709_v45 = vmul.f32 0.044715, %v1707_v41  ;;  %v1706_v46 = vmul.f32 %v1702_v42, %v1702_v42  ;;  %v1863_v43 = vsub.s32 6, %v4736_v7 }
 0x7c1   :  { %v1711_v48 = vadd.f32 %v1709_v45, %v1699_v38  ;;  %v1708_v49 = vmul.f32 %v1706_v46, %v1702_v42 }
 0x7c3   :  { %v1713_v52 = vmul.f32 0.7978846, %v1711_v48  ;;  %v1710_v53 = vmul.f32 0.044715, %v1708_v49  ;;  %v1864_v48 = vrot.slane %v4744_v9, %v1863_v43  ;;  %v1869_v49 = vsub.s32 7, %v4736_v7 }
 0x7c5   :  { %4540 = vtanh.f32 %v1713_v52  ;;  %v1712_v54 = vadd.f32 %v1710_v53, %v1702_v42 }
 0x7c7   :  { %v1714_v55 = vmul.f32 0.7978846, %v1712_v54 }
 0x7c9   :  { %4542 = vtanh.f32 %v1714_v55  ;;  %v1870_v55 = vrot.slane %v4744_v9, %v1869_v49 }
 0x7d2   :  { %v4541_v47 = vpop.eup %4540 }
 0x7d3   :  { %v1717_v3 = vadd.f32 1.0, %v4541_v47 }
 0x7d5   :  { %v1719_v57 = vmul.f32 0.5, %v1717_v3 }
 0x7d6   :  { %v4543_v56 = vpop.eup %4542 }
 0x7d7   :  { %v1718_v4 = vadd.f32 1.0, %v4543_v56  ;;  %v1721_v59 = vmul.f32 %v1719_v57, %v1699_v38 }
 0x7d9   :  { %v1720_v58 = vmul.f32 0.5, %v1718_v4  ;;  %v5106_v4 = vld [vmem:[%s5498_s9 + $0x8] sm:$0xff] }
 0x7da   :  { %v1884_v9 = vrot.slane %v5106_v4, %v4739_v8 }
 0x7db   :  { %v1722_v60 = vmul.f32 %v1720_v58, %v1702_v42 }
 0x7dd   :  { %v1723_v63 = vpack.c.bf16 %v1722_v60, %v1721_v59 }
 0x7df   :  { %4277 = vmatmul.mubr.bf16.vlgmr.msra.gmra.mxu1 %v1723_v63 }
 0x7e0   :  { %4320 = vmatprep.mubr.msk.f32.mxu1 %vm4631_vm0, %v4630_v1 }
 0x89f   :  { %v1826_v5 = vpop.f32.mrf.mxu1 }
 0x8a0   :  { %v1827_v10 = vadd.f32 %v1826_v5, %v1743_v2 }
 0x8a1   :  { %v4278_v11 = vpop.f32.mrf.mxu1 }
 0x8a2   :  { %v1833_v13 = vadd.f32 %v1827_v10, %v5021_v28 }
 0x8a3   :  { %v1829_v23 = vpop.f32.mrf.mxu1 }
 0x8a4   :  { %v1830_v24 = vadd.f32 %v1829_v23, %v1743_v2  ;;  %v1835_v25 = vsel %vm74_vm1, %v1833_v13, 0.0 }
 0x8a5   :  { %1836 = vadd.xlane.f32.xlu0 %v1835_v25  ;;  %v4279_v26 = vpop.f32.mrf.mxu1 }
 0x8a6   :  { %v1834_v27 = vadd.f32 %v1830_v24, %v5023_v29  ;;  %v4488_v29 = vld [vmem:[%s5493_s4 + $0x18] sm:$0xff]  }
 0x8a7   :  { %4281 = vmatpush3.bf16.msra.mxu0 %v4488_v29 }
 0x8a8   :  { %v1838_v30 = vsel %vm74_vm1, %v1834_v27, 0.0  ;;  %4282 = vmatprep.subr.bf16.mxu0 %v4630_v1 }
 0x8a9   :  { %1839 = vadd.xlane.f32.xlu1 %v1838_v30 }
 0x8ab   :  { %4283 = vmatpush3.bf16.msra.mxu0 %v4489_v36 }
 0x8ac   :  { %4288 = vmatprep.subr.mxu0 %v4630_v1 }
 0x92e   :  { %v1837_v31 = vpop.xlane.xlu0 %1836 }
 0x92f   :  { %v1841_v21 = vmul.f32 0.03125, %v1837_v31 }
 0x931   :  { %v1843_v22 = vsub.f32 %v1833_v13, %v1841_v21 }
 0x932   :  { %v1840_v12 = vpop.xlane.xlu1 %1839 }
 0x933   :  { %v1842_v33 = vmul.f32 0.03125, %v1840_v12  ;;  %v1845_v34 = vmul.f32 %v1843_v22, %v1843_v22 }
 0x935   :  { %v1844_v18 = vsub.f32 %v1834_v27, %v1842_v33  ;;  %v1847_v28 = vsel %vm74_vm1, %v1845_v34, 0.0 }
 0x936   :  { %1848 = vadd.xlane.f32.xlu0 %v1847_v28 }
 0x937   :  { %v1846_v15 = vmul.f32 %v1844_v18, %v1844_v18 }
 0x939   :  { %v1850_v19 = vsel %vm74_vm1, %v1846_v15, 0.0 }
 0x93a   :  { %1851 = vadd.xlane.f32.xlu1 %v1850_v19 }
 0x9bf   :  { %v1849_v38 = vpop.xlane.xlu0 %1848 }
 0x9c0   :  { %v1853_v35 = vmul.f32 0.03125, %v1849_v38 }
 0x9c2   :  { %v1855_v39 = vadd.f32 1e-12, %v1853_v35 }
 0x9c3   :  { %v1852_v40 = vpop.xlane.xlu1 %1851 }
 0x9c4   :  { %4544 = vrsqrt.f32 %v1855_v39  ;;  %v1854_v41 = vmul.f32 0.03125, %v1852_v40 }
 0x9c6   :  { %v1856_v42 = vadd.f32 1e-12, %v1854_v41 }
 0x9c8   :  { %4546 = vrsqrt.f32 %v1856_v42 }
 0x9d1   :  { %v4545_v45 = vpop.eup %4544 }
 0x9d2   :  { %v1859_v46 = vmul.f32 %v4545_v45, %v1843_v22 }
 0x9d4   :  { %v1865_v54 = vmul.f32 %v1864_v48, %v1859_v46 }
 0x9d5   :  { %v4547_v52 = vpop.eup %4546 }
 0x9d6   :  { %v1860_v53 = vmul.f32 %v4547_v52, %v1844_v18  ;;  %v5094_v3 = vadd.f32 %v1870_v55, %v1865_v54 }
 0x9d8   :  { %v1866_v47 = vmul.f32 %v1864_v48, %v1860_v53 }
 0x9da   :  { %v5096_v56 = vadd.f32 %v1870_v55, %v1866_v47 }
 0x9dc   :  { %v1875_v57 = vpack.c.bf16 %v5096_v56, %v5094_v3 }
 0x9de   :  { %4285 = vmatmul.mubr.msk.bf16.vlgmr.msra.gmra.mxu0 %vm74_vm1, %v1875_v57 }
 0x9df   :  { %4290 = vmatprep.mubr.msk.f32.mxu0 %vm4631_vm0, %v4630_v1 }
 0xa9e   :  { %v1934_v58 = vpop.f32.mrf.mxu0 }
 0xa9f   :  { %v5110_v59 = vadd.f32 %v1934_v58, %v1884_v9 }
 0xaa0   :  { %v4286_v60 = vpop.f32.mrf.mxu0 }
 0xaa1   :  { %1943 = vrot.lane.b32.xlu0 %v5110_v59, %s4633_s13 }
 0xaa2   :  { %v1937_v63 = vpop.f32.mrf.mxu0 }
 0xaa3   :  { %v5114_v2 = vadd.f32 %v1937_v63, %v1884_v9 }
 0xaa4   :  { %v4287_v5 = vpop.f32.mrf.mxu0 }
 0xaa5   :  { %1949 = vrot.lane.b32.xlu0 %v5114_v2, %s4632_s30  ;;  %1945 = vrot.lane.b32.xlu1 %v5114_v2, %s4633_s13 }
 0xaa9   :  { %1953 = vrot.lane.b32.xlu0 %v5114_v2, %s4634_s14  ;;  %1947 = vrot.lane.b32.xlu1 %v5110_v59, %s4632_s30 }
 0xaad   :  { %2031 = vrot.lane.b32.xlu0 %v5114_v2, %s4635_s15  ;;  %1951 = vrot.lane.b32.xlu1 %v5110_v59, %s4634_s14 }
 0xab1   :  { %1955 = vrot.lane.b32.xlu1 %v5110_v59, %s4635_s15 }
 0xb13   :  { %v5130_v10 = vpop.permute.xlu0 %1943 }
 0xb14   :  { %2107 = vrot.lane.b32.xlu1 %v5130_v10, %s4635_s15 }
 0xb17   :  { %v5134_v11 = vpop.permute.xlu1 %1945  ;;  %v5138_v13 = vpop.permute.xlu0 %1949 }
 0xb18   :  { %2183 = vrot.lane.b32.xlu0 %v5134_v11, %s4635_s15 }
 0xb1b   :  { %v5140_v23 = vpop.permute.xlu1 %1947  ;;  %v5146_v24 = vpop.permute.xlu0 %1953 }
 0xb1c   :  { %2335 = vrot.lane.b32.xlu0 %v5138_v13, %s4635_s15  ;;  %2259 = vrot.lane.b32.xlu1 %v5140_v23, %s4635_s15 }
 0xb1f   :  { %v5148_v25 = vpop.permute.xlu1 %1951  ;;  %v2032_v27 = vpop.permute.xlu0 %2031 }
 0xb20   :  { %2487 = vrot.lane.b32.xlu0 %v5146_v24, %s4635_s15  ;;  %2411 = vrot.lane.b32.xlu1 %v5148_v25, %s4635_s15 }
 0xb23   :  { %v1956_v26 = vpop.permute.xlu1 %1955 }
 0xb24   :  { %4289 = vmatpush3.xpose.msk.msra.mxu0 %vm135_vm2, %v1956_v26 }
 0xb25   :  { %4293 = vmatprep.subr.mxu0 %v4630_v1 }
 0xb27   :  { %4291 = vmatmul.mubr.msk.f32.vlgmr.msra.gmra.mxu0 %vm135_vm2, %v5110_v59 }
 0xb28   :  { %4294 = vmatpush3.xpose.msk.msra.mxu0 %vm135_vm2, %v2032_v27  ;;  %4295 = vmatprep.mubr.msk.f32.mxu0 %vm4631_vm0, %v4630_v1 }
 0xb29   :  { %4298 = vmatprep.subr.mxu0 %v4630_v1 }
 0xb2b   :  { %4296 = vmatmul.mubr.msk.f32.vlgmr.msra.gmra.mxu0 %vm135_vm2, %v5114_v2 }
 0xb2c   :  { %4300 = vmatprep.mubr.msk.f32.mxu0 %vm4631_vm0, %v4630_v1 }
 0xb86   :  { %v2108_v30 = vpop.permute.xlu1 %2107 }
 0xb87   :  { %4299 = vmatpush3.xpose.msk.msra.mxu0 %vm135_vm2, %v2108_v30 }
 0xb88   :  { %4303 = vmatprep.subr.mxu0 %v4630_v1 }
 0xb8a   :  { %v2184_v31 = vpop.permute.xlu0 %2183  ;;  %4301 = vmatmul.mubr.msk.f32.vlgmr.msra.gmra.mxu0 %vm135_vm2, %v5130_v10 }
 0xb8b   :  { %4304 = vmatpush3.xpose.msk.msra.mxu0 %vm135_vm2, %v2184_v31  ;;  %4305 = vmatprep.mubr.msk.f32.mxu0 %vm4631_vm0, %v4630_v1 }
 0xb8c   :  { %4308 = vmatprep.subr.mxu0 %v4630_v1 }
 0xb8e   :  { %4306 = vmatmul.mubr.msk.f32.vlgmr.msra.gmra.mxu0 %vm135_vm2, %v5134_v11  ;;  %v2260_v21 = vpop.permute.xlu1 %2259  ;;  %v2336_v22 = vpop.permute.xlu0 %2335 }
 0xb8f   :  { %4309 = vmatpush3.xpose.msk.msra.mxu0 %vm135_vm2, %v2260_v21  ;;  %4310 = vmatprep.mubr.msk.f32.mxu0 %vm4631_vm0, %v4630_v1 }
 0xb90   :  { %4313 = vmatprep.subr.mxu0 %v4630_v1 }
 0xb92   :  { %4311 = vmatmul.mubr.msk.f32.vlgmr.msra.gmra.mxu0 %vm135_vm2, %v5140_v23  ;;  %v2412_v12 = vpop.permute.xlu1 %2411  ;;  %v2488_v33 = vpop.permute.xlu0 %2487 }
 0xb93   :  { %4314 = vmatpush3.xpose.msk.msra.mxu0 %vm135_vm2, %v2336_v22  ;;  %4319 = vmatpush3.xpose.msk.msra.mxu1 %vm135_vm2, %v2412_v12 }
 0xb94   :  { %4315 = vmatprep.mubr.msk.f32.mxu0 %vm4631_vm0, %v4630_v1  ;;  %4323 = vmatprep.subr.mxu0 %v4630_v1 }
 0xb95   :  { %4328 = vmatprep.subr.mxu1 %v4630_v1 }
 0xb96   :  { %4316 = vmatmul.mubr.msk.f32.vlgmr.msra.gmra.mxu0 %vm135_vm2, %v5138_v13  ;;  %4321 = vmatmul.mubr.msk.f32.vlgmr.msra.gmra.mxu1 %vm135_vm2, %v5148_v25 }
 0xb97   :  { %4324 = vmatpush3.xpose.msk.msra.mxu0 %vm135_vm2, %v2488_v33  ;;  %4325 = vmatprep.mubr.msk.f32.mxu0 %vm4631_vm0, %v4630_v1 }
 0xb98   :  { %4333 = vmatprep.subr.mxu0 %v4630_v1  ;;  %4330 = vmatprep.mubr.msk.f32.mxu1 %vm4631_vm0, %v4630_v1 }
 0xb9a   :  { %4326 = vmatmul.mubr.msk.f32.vlgmr.msra.gmra.mxu0 %vm135_vm2, %v5146_v24 }
 0xb9b   :  { %4335 = vmatprep.mubr.msk.f32.mxu0 %vm4631_vm0, %v4630_v1 }
 0xbe7   :  { %v2027_v34 = vpop.f32.mrf.mxu0 }
 0xbe8   :  { %v2563_v18 = vmul.f32 0.35355338, %v2027_v34 }
 0xbe9   :  { %v4292_v28 = vpop.f32.mrf.mxu0 }
 0xbea   :  { %v2571_v15 = vadd.f32 %v4843_v32, %v2563_v18 }
 0xbeb   :  { %v2103_v19 = vpop.f32.mrf.mxu0 }
 0xbec   :  { %v2564_v29 = vmul.f32 0.35355338, %v2103_v19  ;;  %v2579_v36 = vsel %vm135_vm2, %v2571_v15, -inf }
 0xbed   :  { %2580 = vmax.xlane.f32.xlu1 %v2579_v36  ;;  %v4297_v38 = vpop.f32.mrf.mxu0 }
 0xbee   :  { %v2572_v35 = vadd.f32 %v4851_v37, %v2564_v29 }
 0xbf0   :  { %v2582_v39 = vsel %vm135_vm2, %v2572_v35, -inf }
 0xbf1   :  { %2583 = vmax.xlane.f32.xlu0 %v2582_v39 }
 0xc4a   :  { %v2179_v40 = vpop.f32.mrf.mxu0 }
 0xc4b   :  { %v2565_v41 = vmul.f32 0.35355338, %v2179_v40 }
 0xc4c   :  { %v4302_v42 = vpop.f32.mrf.mxu0 }
 0xc4d   :  { %v2573_v45 = vadd.f32 %v4860_v44, %v2565_v41 }
 0xc4e   :  { %v2255_v46 = vpop.f32.mrf.mxu0 }
 0xc4f   :  { %v2566_v48 = vmul.f32 0.35355338, %v2255_v46  ;;  %v2585_v32 = vsel %vm135_vm2, %v2573_v45, -inf }
 0xc50   :  { %2586 = vmax.xlane.f32.xlu0 %v2585_v32  ;;  %v4307_v52 = vpop.f32.mrf.mxu0 }
 0xc51   :  { %v2574_v53 = vadd.f32 %v4866_v50, %v2566_v48 }
 0xc52   :  { %v2331_v54 = vpop.f32.mrf.mxu0 }
 0xc53   :  { %v2567_v55 = vmul.f32 0.35355338, %v2331_v54  ;;  %v2588_v37 = vsel %vm135_vm2, %v2574_v53, -inf }
 0xc54   :  { %2589 = vmax.xlane.f32.xlu1 %v2588_v37  ;;  %v4312_v47 = vpop.f32.mrf.mxu0 }
 0xc55   :  { %v2575_v57 = vadd.f32 %v4871_v51, %v2567_v55 }
 0xc56   :  { %v2407_v9 = vpop.f32.mrf.mxu0  ;;  %v2483_v58 = vpop.f32.mrf.mxu1 }
 0xc57   :  { %v2568_v60 = vmul.f32 0.35355338, %v2407_v9  ;;  %v2569_v44 = vmul.f32 0.35355338, %v2483_v58  ;;  %v2591_v63 = vsel %vm135_vm2, %v2575_v57, -inf }
 0xc58   :  { %2592 = vmax.xlane.f32.xlu0 %v2591_v63  ;;  %v4317_v5 = vpop.f32.mrf.mxu0  ;;  %v4322_v26 = vpop.f32.mrf.mxu1 }
 0xc59   :  { %v2576_v27 = vadd.f32 %v4879_v61, %v2568_v60  ;;  %v2577_v50 = vadd.f32 %v4884_v62, %v2569_v44 }
 0xc5a   :  { %v2559_v30 = vpop.f32.mrf.mxu0 }
 0xc5b   :  { %v2570_v31 = vmul.f32 0.35355338, %v2559_v30  ;;  %v2594_v21 = vsel %vm135_vm2, %v2576_v27, -inf  ;;  %v2597_v22 = vsel %vm135_vm2, %v2577_v50, -inf }
 0xc5c   :  { %2595 = vmax.xlane.f32.xlu1 %v2594_v21  ;;  %v4327_v51 = vpop.f32.mrf.mxu0  ;;  %2598 = vmax.xlane.f32.xlu0 %v2597_v22 }
 0xc5d   :  { %v2578_v12 = vadd.f32 %v4893_v16, %v2570_v31 }
 0xc5f   :  { %v2600_v33 = vsel %vm135_vm2, %v2578_v12, -inf }
 0xc60   :  { %2601 = vmax.xlane.f32.xlu1 %v2600_v33 }
 0xc71   :  { %2743 = vrot.lane.b32.xlu1 %v5114_v2, %s4636_s17 }
 0xc72   :  { %2667 = vrot.lane.b32.xlu0 %v5110_v59, %s4636_s17 }
 0xc75   :  { %2819 = vrot.lane.b32.xlu1 %v5130_v10, %s4636_s17 }
 0xc76   :  { %2895 = vrot.lane.b32.xlu0 %v5134_v11, %s4636_s17  ;;  %v2581_v61 = vpop.xlane.xlu1 %2580 }
 0xc77   :  { %v2603_v62 = vsub.f32 %v2571_v15, %v2581_v61 }
 0xc79   :  { %2971 = vrot.lane.b32.xlu1 %v5140_v23, %s4636_s17  ;;  %v2611_v34 = vmul.f32 1.442695, %v2603_v62 }
 0xc7a   :  { %3047 = vrot.lane.b32.xlu0 %v5138_v13, %s4636_s17  ;;  %v2584_v16 = vpop.xlane.xlu0 %2583 }
 0xc7b   :  { %v2604_v2 = vsub.f32 %v2572_v35, %v2584_v16  ;;  %4548 = vpow2.f32 %v2611_v34 }
 0xc7d   :  { %v2613_v18 = vmul.f32 1.442695, %v2604_v2 }
 0xc7f   :  { %4550 = vpow2.f32 %v2613_v18 }
 0xc88   :  { %v5230_v59 = vpop.eup %4548 }
 0xc89   :  { %v2627_v10 = vsel %vm135_vm2, %v5230_v59, 0.0 }
 0xc8c   :  { %v5234_v11 = vpop.eup %4550 }
 0xc8d   :  { %v2630_v23 = vsel %vm135_vm2, %v5234_v11, 0.0 }
 0xc99   :  { %2628 = vadd.xlane.f32.xlu0 %v2627_v10 }
 0xc9d   :  { %2631 = vadd.xlane.f32.xlu1 %v2630_v23 }
 0xcd9   :  { %v2587_v13 = vpop.xlane.xlu0 %2586 }
 0xcda   :  { %v2605_v28 = vsub.f32 %v2573_v45, %v2587_v13 }
 0xcdc   :  { %v2615_v15 = vmul.f32 1.442695, %v2605_v28 }
 0xcdd   :  { %v2590_v19 = vpop.xlane.xlu1 %2589 }
 0xcde   :  { %4552 = vpow2.f32 %v2615_v15  ;;  %v2606_v29 = vsub.f32 %v2574_v53, %v2590_v19 }
 0xce0   :  { %v2617_v36 = vmul.f32 1.442695, %v2606_v29 }
 0xce1   :  { %v2593_v38 = vpop.xlane.xlu0 %2592 }
 0xce2   :  { %4554 = vpow2.f32 %v2617_v36  ;;  %v2607_v35 = vsub.f32 %v2575_v57, %v2593_v38 }
 0xce4   :  { %v2619_v32 = vmul.f32 1.442695, %v2607_v35 }
 0xce5   :  { %v2596_v39 = vpop.xlane.xlu1 %2595  ;;  %v2599_v40 = vpop.xlane.xlu0 %2598 }
 0xce6   :  { %v2608_v41 = vsub.f32 %v2576_v27, %v2596_v39  ;;  %v2609_v42 = vsub.f32 %v2577_v50, %v2599_v40 }
 0xce8   :  { %v2621_v46 = vmul.f32 1.442695, %v2608_v41  ;;  %v2623_v48 = vmul.f32 1.442695, %v2609_v42 }
 0xce9   :  { %v2602_v52 = vpop.xlane.xlu1 %2601  ;;  %v2668_v54 = vpop.permute.xlu0 %2667 }
 0xcea   :  { %4556 = vpow2.f32 %v2621_v46  ;;  %v2610_v55 = vsub.f32 %v2578_v12, %v2602_v52  ;;  %4329 = vmatpush3.msra.mxu1 %v2668_v54 }
 0xceb   :  { %v4553_v45 = vpop.eup %4552  ;;  %4558 = vpow2.f32 %v2623_v48  ;;  %4338 = vmatprep.subr.mxu1 %v4630_v1 }
 0xcec   :  { %v2625_v53 = vmul.f32 1.442695, %v2610_v55  ;;  %v2633_v37 = vsel %vm135_vm2, %v4553_v45, 0.0  ;;  %4560 = vpow2.f32 %v2619_v32 }
 0xced   :  { %v2744_v47 = vpop.permute.xlu1 %2743  ;;  %2634 = vadd.xlane.f32.xlu0 %v2633_v37  ;;  %v2896_v30 = vpop.permute.xlu0 %2895  ;;  %v4490_v37 = vld [vmem:[%s5494_s5 + $0x18] sm:$0xff]  }
 0xcee   :  { %4562 = vpow2.f32 %v2625_v53  ;;  %4334 = vmatpush3.msra.mxu0 %v2744_v47 }
 0xcef   :  { %v4555_v57 = vpop.eup %4554  ;;  %4343 = vmatprep.subr.mxu0 %v4630_v1 }
 0xcf0   :  { %v2636_v9 = vsel %vm135_vm2, %v4555_v57, 0.0 }
 0xcf1   :  { %2637 = vadd.xlane.f32.xlu1 %v2636_v9  ;;  %v2820_v31 = vpop.permute.xlu1 %2819  ;;  %v3048_v21 = vpop.permute.xlu0 %3047 }
 0xcf5   :  { %v2972_v22 = vpop.permute.xlu1 %2971 }
 0xcf7   :  { %v4557_v58 = vpop.eup %4556 }
 0xcf8   :  { %v5242_v60 = vpop.eup %4558  ;;  %v2642_v44 = vsel %vm135_vm2, %v4557_v58, 0.0 }
 0xcf9   :  { %2643 = vadd.xlane.f32.xlu1 %v2642_v44  ;;  %v2645_v63 = vsel %vm135_vm2, %v5242_v60, 0.0  ;;  %v5247_v5 = vpop.eup %4560 }
 0xcfa   :  { %2646 = vadd.xlane.f32.xlu0 %v2645_v63  ;;  %v2639_v50 = vsel %vm135_vm2, %v5247_v5, 0.0 }
 0xcfb   :  { %v4563_v26 = vpop.eup %4562 }
 0xcfc   :  { %v2648_v27 = vsel %vm135_vm2, %v4563_v26, 0.0 }
 0xcfd   :  { %2649 = vadd.xlane.f32.xlu1 %v2648_v27 }
 0xcfe   :  { %2640 = vadd.xlane.f32.xlu0 %v2639_v50 }
 0xd0e   :  { %3123 = vrot.lane.b32.xlu1 %v5148_v25, %s4636_s17 }
 0xd14   :  { %3199 = vrot.lane.b32.xlu0 %v5146_v24, %s4636_s17 }
 0xd22   :  { %v2629_v51 = vpop.xlane.xlu0 %2628 }
 0xd23   :  { %4564 = vrcp.f32 %v2629_v51 }
 0xd26   :  { %v2632_v12 = vpop.xlane.xlu1 %2631 }
 0xd27   :  { %4566 = vrcp.f32 %v2632_v12 }
 0xd30   :  { %v4565_v33 = vpop.eup %4564 }
 0xd31   :  { %v2659_v61 = vmul.f32 %v4565_v33, %v5230_v59 }
 0xd33   :  { %4331 = vmatmul.mubr.msk.f32.vlgmr.msra.gmra.mxu1 %vm135_vm2, %v2659_v61 }
 0xd34   :  { %v4567_v62 = vpop.eup %4566  ;;  %4339 = vmatpush3.msra.mxu1 %v2820_v31  ;;  %4340 = vmatprep.mubr.msk.f32.mxu1 %vm4631_vm0, %v4630_v1 }
 0xd35   :  { %v2660_v24 = vmul.f32 %v4567_v62, %v5234_v11  ;;  %4348 = vmatprep.subr.mxu1 %v4630_v1 }
 0xd37   :  { %4336 = vmatmul.mubr.msk.f32.vlgmr.msra.gmra.mxu0 %vm135_vm2, %v2660_v24 }
 0xd38   :  { %4344 = vmatpush3.msra.mxu0 %v2896_v30  ;;  %4345 = vmatprep.mubr.msk.f32.mxu0 %vm4631_vm0, %v4630_v1 }
 0xd39   :  { %4353 = vmatprep.subr.mxu0 %v4630_v1 }
 0xd76   :  { %v2635_v25 = vpop.xlane.xlu0 %2634 }
 0xd77   :  { %4568 = vrcp.f32 %v2635_v25 }
 0xd7a   :  { %v2638_v16 = vpop.xlane.xlu1 %2637 }
 0xd7b   :  { %4570 = vrcp.f32 %v2638_v16 }
 0xd82   :  { %v2644_v34 = vpop.xlane.xlu1 %2643 }
 0xd83   :  { %4572 = vrcp.f32 %v2644_v34  ;;  %v2647_v2 = vpop.xlane.xlu0 %2646 }
 0xd84   :  { %v4569_v18 = vpop.eup %4568 }
 0xd85   :  { %v2661_v59 = vmul.f32 %v4569_v18, %v4553_v45 }
 0xd86   :  { %v2650_v10 = vpop.xlane.xlu1 %2649 }
 0xd87   :  { %4574 = vrcp.f32 %v2650_v10  ;;  %v2641_v11 = vpop.xlane.xlu0 %2640  ;;  %4341 = vmatmul.mubr.msk.f32.vlgmr.msra.gmra.mxu1 %vm135_vm2, %v2661_v59  ;;  %v3314_v10 = vrot.slane %v5106_v4, %v4993_v17 }
 0xd88   :  { %v4571_v23 = vpop.eup %4570  ;;  %4576 = vrcp.f32 %v2641_v11  ;;  %4349 = vmatpush3.msra.mxu1 %v2972_v22  ;;  %4350 = vmatprep.mubr.msk.f32.mxu1 %vm4631_vm0, %v4630_v1 }
 0xd89   :  { %v2662_v13 = vmul.f32 %v4571_v23, %v4555_v57  ;;  %4358 = vmatprep.subr.mxu1 %v4630_v1  ;;  %4578 = vrcp.f32 %v2647_v2  ;;  %v4491_v57 = vld [vmem:[%s5494_s5 + $0x10] sm:$0xff]  }
 0xd8a   :  { %v3124_v40 = vpop.permute.xlu1 %3123 }
 0xd8b   :  { %4346 = vmatmul.mubr.msk.f32.vlgmr.msra.gmra.mxu0 %vm135_vm2, %v2662_v13  ;;  %v3200_v19 = vpop.permute.xlu0 %3199 }
 0xd8c   :  { %4354 = vmatpush3.msra.mxu0 %v3048_v21  ;;  %4355 = vmatprep.mubr.msk.f32.mxu0 %vm4631_vm0, %v4630_v1 }
 0xd8d   :  { %4363 = vmatprep.subr.mxu0 %v4630_v1 }
 0xd90   :  { %v4573_v28 = vpop.eup %4572 }
 0xd91   :  { %v2664_v15 = vmul.f32 %v4573_v28, %v4557_v58 }
 0xd93   :  { %4356 = vmatmul.mubr.msk.f32.vlgmr.msra.gmra.mxu0 %vm135_vm2, %v2664_v15 }
 0xd94   :  { %v4575_v29 = vpop.eup %4574  ;;  %4364 = vmatpush3.msra.mxu0 %v3200_v19  ;;  %4365 = vmatprep.mubr.msk.f32.mxu0 %vm4631_vm0, %v4630_v1 }
 0xd95   :  { %v4577_v36 = vpop.eup %4576  ;;  %v2666_v38 = vmul.f32 %v4575_v29, %v4563_v26  ;;  %4376 = vmatprep.subr.bf16.mxu0 %v4630_v1 }
 0xd96   :  { %v2663_v35 = vmul.f32 %v4577_v36, %v5247_v5  ;;  %v4579_v39 = vpop.eup %4578 }
 0xd97   :  { %4366 = vmatmul.mubr.msk.f32.vlgmr.msra.gmra.mxu0 %vm135_vm2, %v2666_v38  ;;  %v2665_v41 = vmul.f32 %v4579_v39, %v5242_v60 }
 0xd98   :  { %4351 = vmatmul.mubr.msk.f32.vlgmr.msra.gmra.mxu1 %vm135_vm2, %v2663_v35  ;;  %4380 = vmatprep.mubr.msk.bf16.mxu0 %vm4631_vm0, %v4630_v1 }
 0xd99   :  { %4359 = vmatpush3.msra.mxu1 %v3124_v40  ;;  %4360 = vmatprep.mubr.msk.f32.mxu1 %vm4631_vm0, %v4630_v1 }
 0xd9a   :  { %4368 = vmatprep.subr.bf16.mxu1 %v4630_v1 }
 0xd9c   :  { %4361 = vmatmul.mubr.msk.f32.vlgmr.msra.gmra.mxu1 %vm135_vm2, %v2665_v41 }
 0xd9d   :  { %4372 = vmatprep.mubr.msk.bf16.mxu1 %vm4631_vm0, %v4630_v1  ;;  %4369 = vmatpush3.bf16.msra.mxu1 %v4490_v37 }
 0xd9e   :  { %4370 = vmatprep.subr.bf16.mxu1 %v4630_v1 }
 0xda1   :  { %4371 = vmatpush3.bf16.msra.mxu1 %v4491_v57 }
 0xda2   :  { %4384 = vmatprep.subr.bf16.mxu1 %v4630_v1 }
 0xdf3   :  { %v2739_v42 = vpop.f32.mrf.mxu1 }
 0xdf5   :  { %v4332_v46 = vpop.f32.mrf.mxu1 }
 0xdf7   :  { %v2815_v48 = vpop.f32.mrf.mxu0 }
 0xdf9   :  { %v4337_v32 = vpop.f32.mrf.mxu0 }
 0xe47   :  { %v2891_v52 = vpop.f32.mrf.mxu1 }
 0xe49   :  { %v4342_v54 = vpop.f32.mrf.mxu1 }
 0xe4b   :  { %v2967_v55 = vpop.f32.mrf.mxu0 }
 0xe4c   :  { %v4459_v45 = vpack.i.bf16 %v2967_v55, %v2891_v52  ;;  %v4493_v55 = vld [vmem:[%s5495_s6 + $0x10] sm:$0xff]  }
 0xe4d   :  { %v4347_v53 = vpop.f32.mrf.mxu0 }
 0xe4e   :  { %4460 = vrot.lane.b32.xlu1 %v4459_v45, %s4637_s21 }
 0xe53   :  { %v3119_v47 = vpop.f32.mrf.mxu0 }
 0xe55   :  { %v4357_v9 = vpop.f32.mrf.mxu0 }
 0xe57   :  { %v3271_v58 = vpop.f32.mrf.mxu0 }
 0xe58   :  { %v3043_v60 = vpop.f32.mrf.mxu1 }
 0xe59   :  { %v4464_v44 = vpack.i.bf16 %v3119_v47, %v3043_v60  ;;  %v4367_v63 = vpop.f32.mrf.mxu0 }
 0xe5a   :  { %v4352_v5 = vpop.f32.mrf.mxu1 }
 0xe5b   :  { %4465 = vrot.lane.b32.xlu0 %v4464_v44, %s4638_s22  ;;  %v3402_v44 = vrot.slane %v5106_v4, %v5012_v6 }
 0xe5c   :  { %v3195_v26 = vpop.f32.mrf.mxu1 }
 0xe5d   :  { %v4469_v27 = vpack.i.bf16 %v3271_v58, %v3195_v26 }
 0xe5e   :  { %v4362_v50 = vpop.f32.mrf.mxu1 }
 0xe5f   :  { %4470 = vrot.lane.b32.xlu1 %v4469_v27, %s4639_s23  ;;  %v3408_v27 = vrot.slane %v5106_v4, %v5017_v14 }
 0xec0   :  { %v4461_v30 = vpop.permute.xlu1 %4460 }
 0xec1   :  { %v4463_v21 = vunpack.i.h.bf16 %v4461_v30  ;;  %v4462_v22 = vunpack.i.l.bf16 %v4461_v30 }
 0xec3   :  { %v3300_v61 = vsel %vm135_vm2, %v2815_v48, %v4463_v21  ;;  %v3299_v62 = vsel %vm135_vm2, %v2739_v42, %v4462_v22  ;;  %v4494_v22 = vld [vmem:[%s5496_s7 + $0x78] sm:$0xff]  }
 0xecd   :  { %v4466_v31 = vpop.permute.xlu0 %4465 }
 0xece   :  { %v4468_v51 = vunpack.i.h.bf16 %v4466_v31  ;;  %v4467_v12 = vunpack.i.l.bf16 %v4466_v31 }
 0xed0   :  { %v3302_v16 = vsel %vm1528_vm3, %v3300_v61, %v4468_v51  ;;  %v3301_v34 = vsel %vm1528_vm3, %v3299_v62, %v4467_v12  ;;  %v4495_v51 = vld [vmem:[%s5496_s7 + $0x70] sm:$0xff]   ;;  %v4496_v12 = vld [vmem:[%s5496_s7 + $0x68] sm:$0xff]   ;;  %v4498_v61 = vld [vmem:[%s5496_s7 + $0x58] sm:$0xff]  }
 0xed1   :  { %v4471_v33 = vpop.permute.xlu1 %4470  ;;  %v4499_v62 = vld [vmem:[%s5496_s7 + $0x50] sm:$0xff]  }
 0xed2   :  { %v4473_v24 = vunpack.i.h.bf16 %v4471_v33  ;;  %v4472_v25 = vunpack.i.l.bf16 %v4471_v33  ;;  %v4497_v33 = vld [vmem:[%s5496_s7 + $0x60] sm:$0xff]  }
 0xed4   :  { %v3304_v2 = vsel %vm1531_vm4, %v3302_v16, %v4473_v24  ;;  %v3303_v18 = vsel %vm1531_vm4, %v3301_v34, %v4472_v25  ;;  %v4500_v24 = vld [vmem:[%s5496_s7 + $0x48] sm:$0xff]   ;;  %v4501_v25 = vld [vmem:[%s5496_s7 + $0x40] sm:$0xff]   ;;  %v3420_v16 = vrot.slane %v5106_v4, %v1647_v20 }
 0xed5   :  { %v3305_v59 = vpack.c.bf16 %v3304_v2, %v3303_v18 }
 0xed7   :  { %4373 = vmatmul.mubr.msk.bf16.vlgmr.msra.gmra.mxu1 %vm74_vm1, %v3305_v59 }
 0xed8   :  { %4400 = vmatprep.mubr.msk.bf16.mxu1 %vm4631_vm0, %v4630_v1  ;;  %4385 = vmatpush3.bf16.msra.mxu1 %v4494_v22 }
 0xed9   :  { %4386 = vmatprep.subr.bf16.mxu1 %v4630_v1 }
 0xedc   :  { %4387 = vmatpush3.bf16.msra.mxu1 %v4495_v51  ;;  %v4503_v51 = vld [vmem:[%s5497_s8] sm:$0xff]  }
 0xedd   :  { %4388 = vmatprep.subr.bf16.mxu1 %v4630_v1 }
 0xee0   :  { %4389 = vmatpush3.bf16.msra.mxu1 %v4496_v12 }
 0xee1   :  { %4390 = vmatprep.subr.bf16.mxu1 %v4630_v1 }
 0xee4   :  { %4391 = vmatpush3.bf16.msra.mxu1 %v4497_v33 }
 0xee5   :  { %4392 = vmatprep.subr.bf16.mxu1 %v4630_v1 }
 0xee8   :  { %4393 = vmatpush3.bf16.msra.mxu1 %v4498_v61 }
 0xee9   :  { %4394 = vmatprep.subr.bf16.mxu1 %v4630_v1 }
 0xeec   :  { %4395 = vmatpush3.bf16.msra.mxu1 %v4499_v62 }
 0xeed   :  { %4396 = vmatprep.subr.bf16.mxu1 %v4630_v1 }
 0xef0   :  { %4397 = vmatpush3.bf16.msra.mxu1 %v4500_v24 }
 0xef1   :  { %4398 = vmatprep.subr.bf16.mxu1 %v4630_v1 }
 0xef4   :  { %4399 = vmatpush3.bf16.msra.mxu1 %v4501_v25 }
 0xf97   :  { %v3364_v11 = vpop.f32.mrf.mxu1 }
 0xf98   :  { %v3365_v23 = vadd.f32 %v3364_v11, %v3314_v10 }
 0xf99   :  { %v4374_v13 = vpop.f32.mrf.mxu1 }
 0xf9a   :  { %v3371_v28 = vadd.f32 %v3365_v23, %v5094_v3 }
 0xf9b   :  { %v3367_v15 = vpop.f32.mrf.mxu1 }
 0xf9c   :  { %v3368_v19 = vadd.f32 %v3367_v15, %v3314_v10  ;;  %v3373_v29 = vsel %vm74_vm1, %v3371_v28, 0.0 }
 0xf9d   :  { %3374 = vadd.xlane.f32.xlu0 %v3373_v29  ;;  %v4375_v36 = vpop.f32.mrf.mxu1 }
 0xf9e   :  { %v3372_v38 = vadd.f32 %v3368_v19, %v5096_v56  ;;  %v4492_v56 = vld [vmem:[%s5495_s6 + $0x18] sm:$0xff]  }
 0xf9f   :  { %4377 = vmatpush3.bf16.msra.mxu0 %v4492_v56 }
 0xfa0   :  { %v3376_v35 = vsel %vm74_vm1, %v3372_v38, 0.0  ;;  %4378 = vmatprep.subr.bf16.mxu0 %v4630_v1 }
 0xfa1   :  { %3377 = vadd.xlane.f32.xlu1 %v3376_v35 }
 0xfa3   :  { %4379 = vmatpush3.bf16.msra.mxu0 %v4493_v55 }
 0xfa4   :  { %4404 = vmatprep.subr.bf16.mxu0 %v4630_v1 }
0x1026   :  { %v3375_v39 = vpop.xlane.xlu0 %3374 }
0x1027   :  { %v3379_v40 = vmul.f32 0.03125, %v3375_v39 }
0x1029   :  { %v3381_v41 = vsub.f32 %v3371_v28, %v3379_v40 }
0x102a   :  { %v3378_v42 = vpop.xlane.xlu1 %3377 }
0x102b   :  { %v3380_v46 = vmul.f32 0.03125, %v3378_v42  ;;  %v3383_v48 = vmul.f32 %v3381_v41, %v3381_v41 }
0x102d   :  { %v3382_v32 = vsub.f32 %v3372_v38, %v3380_v46  ;;  %v3385_v3 = vsel %vm74_vm1, %v3383_v48, 0.0 }
0x102e   :  { %3386 = vadd.xlane.f32.xlu0 %v3385_v3 }
0x102f   :  { %v3384_v52 = vmul.f32 %v3382_v32, %v3382_v32 }
0x1031   :  { %v3388_v54 = vsel %vm74_vm1, %v3384_v52, 0.0 }
0x1032   :  { %3389 = vadd.xlane.f32.xlu0 %v3388_v54  ;;  %v3516_v54 = vrot.slane %v5106_v4, %v1742_v0 }
0x10b7   :  { %v3387_v45 = vpop.xlane.xlu0 %3386 }
0x10b8   :  { %v3391_v53 = vmul.f32 0.03125, %v3387_v45 }
0x10ba   :  { %v3393_v37 = vadd.f32 1e-12, %v3391_v53 }
0x10bb   :  { %v3390_v47 = vpop.xlane.xlu0 %3389 }
0x10bc   :  { %4580 = vrsqrt.f32 %v3393_v37  ;;  %v3392_v57 = vmul.f32 0.03125, %v3390_v47 }
0x10be   :  { %v3394_v9 = vadd.f32 1e-12, %v3392_v57 }
0x10c0   :  { %4582 = vrsqrt.f32 %v3394_v9 }
0x10c9   :  { %v4581_v58 = vpop.eup %4580 }
0x10ca   :  { %v3397_v60 = vmul.f32 %v4581_v58, %v3381_v41 }
0x10cc   :  { %v3403_v26 = vmul.f32 %v3402_v44, %v3397_v60 }
0x10cd   :  { %v4583_v63 = vpop.eup %4582 }
0x10ce   :  { %v3398_v5 = vmul.f32 %v4583_v63, %v3382_v32  ;;  %v3409_v30 = vadd.f32 %v3408_v27, %v3403_v26 }
0x10d0   :  { %v3404_v50 = vmul.f32 %v3402_v44, %v3398_v5 }
0x10d2   :  { %v5330_v31 = vadd.f32 %v3408_v27, %v3404_v50 }
0x10d4   :  { %v3411_v21 = vpack.c.bf16 %v5330_v31, %v3409_v30 }
0x10d6   :  { %4381 = vmatmul.mubr.msk.bf16.vlgmr.msra.gmra.mxu0 %vm74_vm1, %v3411_v21 }
0x10d7   :  { %4408 = vmatprep.mubr.msk.bf16.mxu0 %vm4631_vm0, %v4630_v1 }
0x1196   :  { %v3470_v34 = vpop.f32.mrf.mxu0 }
0x1197   :  { %v3471_v2 = vadd.f32 %v3470_v34, %v3420_v16 }
0x1198   :  { %v4382_v18 = vpop.f32.mrf.mxu0 }
0x1199   :  { %v3477_v59 = vmul.f32 %v3471_v2, %v3471_v2 }
0x119a   :  { %v3473_v10 = vpop.f32.mrf.mxu0 }
0x119b   :  { %v3479_v11 = vmul.f32 %v3477_v59, %v3471_v2  ;;  %v3474_v23 = vadd.f32 %v3473_v10, %v3420_v16 }
0x119c   :  { %v4383_v13 = vpop.f32.mrf.mxu0 }
0x119d   :  { %v3481_v28 = vmul.f32 0.044715, %v3479_v11  ;;  %v3478_v15 = vmul.f32 %v3474_v23, %v3474_v23  ;;  %v3643_v11 = vrot.slane %v5106_v4, %v1869_v49 }
0x119f   :  { %v3483_v19 = vadd.f32 %v3481_v28, %v3471_v2  ;;  %v3480_v29 = vmul.f32 %v3478_v15, %v3474_v23 }
0x11a1   :  { %v3485_v36 = vmul.f32 0.7978846, %v3483_v19  ;;  %v3482_v38 = vmul.f32 0.044715, %v3480_v29 }
0x11a3   :  { %4584 = vtanh.f32 %v3485_v36  ;;  %v3484_v35 = vadd.f32 %v3482_v38, %v3474_v23 }
0x11a5   :  { %v3486_v39 = vmul.f32 0.7978846, %v3484_v35 }
0x11a7   :  { %4586 = vtanh.f32 %v3486_v39 }
0x11b0   :  { %v4585_v40 = vpop.eup %4584 }
0x11b1   :  { %v3489_v20 = vadd.f32 1.0, %v4585_v40 }
0x11b3   :  { %v3491_v42 = vmul.f32 0.5, %v3489_v20 }
0x11b4   :  { %v4587_v41 = vpop.eup %4586 }
0x11b5   :  { %v3490_v46 = vadd.f32 1.0, %v4587_v41  ;;  %v3493_v32 = vmul.f32 %v3491_v42, %v3471_v2  ;;  %v3637_v2 = vrot.slane %v5106_v4, %v1863_v43  ;;  %v5398_v43 = vld [vmem:[%s5499_s10] sm:$0xff] }
0x11b6   :  { %v3655_v19 = vrot.slane %v5398_v43, %v4739_v8 }
0x11b7   :  { %v3492_v48 = vmul.f32 0.5, %v3490_v46 }
0x11b9   :  { %v3494_v3 = vmul.f32 %v3492_v48, %v3474_v23 }
0x11bb   :  { %v3495_v52 = vpack.c.bf16 %v3494_v3, %v3493_v32 }
0x11bd   :  { %4401 = vmatmul.mubr.bf16.vlgmr.msra.gmra.mxu1 %v3495_v52 }
0x127d   :  { %v3599_v56 = vpop.f32.mrf.mxu1 }
0x127e   :  { %v3600_v55 = vadd.f32 %v3599_v56, %v3516_v54 }
0x127f   :  { %v4402_v45 = vpop.f32.mrf.mxu1 }
0x1280   :  { %v3606_v53 = vadd.f32 %v3600_v55, %v3409_v30 }
0x1281   :  { %v3602_v37 = vpop.f32.mrf.mxu1 }
0x1282   :  { %v3603_v47 = vadd.f32 %v3602_v37, %v3516_v54  ;;  %v3608_v57 = vsel %vm74_vm1, %v3606_v53, 0.0 }
0x1283   :  { %3609 = vadd.xlane.f32.xlu1 %v3608_v57  ;;  %v4403_v9 = vpop.f32.mrf.mxu1 }
0x1284   :  { %v3607_v58 = vadd.f32 %v3603_v47, %v5330_v31  ;;  %v4502_v31 = vld [vmem:[%s5497_s8 + $0x8] sm:$0xff]   ;;  %v3783_v9 = vld [vmem:[%s5492_s3 + $0x70] sm:$0xff] }
0x1285   :  { %4405 = vmatpush3.bf16.msra.mxu0 %v4502_v31  ;;  %v3778_v31 = vld [vmem:[%s5492_s3 + $0x48] sm:$0xff] }
0x1286   :  { %v3611_v60 = vsel %vm74_vm1, %v3607_v58, 0.0  ;;  %4406 = vmatprep.subr.bf16.mxu0 %v4630_v1 }
0x1287   :  { %3612 = vadd.xlane.f32.xlu0 %v3611_v60 }
0x1289   :  { %4407 = vmatpush3.bf16.msra.mxu0 %v4503_v51 }
0x128a   :  { %4412 = vmatprep.subr.bf16.mxu0 %v4630_v1 }
0x130c   :  { %v3610_v44 = vpop.xlane.xlu1 %3609 }
0x130d   :  { %v3614_v63 = vmul.f32 0.03125, %v3610_v44  ;;  %v3781_v44 = vld [vmem:[%s5492_s3 + $0x60] sm:$0xff] }
0x130f   :  { %v3616_v5 = vsub.f32 %v3606_v53, %v3614_v63  ;;  %v3782_v63 = vld [vmem:[%s5492_s3 + $0x68] sm:$0xff] }
0x1310   :  { %v3613_v26 = vpop.xlane.xlu0 %3612 }
0x1311   :  { %v3615_v0 = vmul.f32 0.03125, %v3613_v26  ;;  %v3618_v27 = vmul.f32 %v3616_v5, %v3616_v5  ;;  %v3791_v26 = vpack.c.bf16 %v3782_v63, %v3781_v44 }
0x1313   :  { %v3617_v50 = vsub.f32 %v3607_v58, %v3615_v0  ;;  %v3620_v30 = vsel %vm74_vm1, %v3618_v27, 0.0  ;;  %v3784_v58 = vld [vmem:[%s5492_s3 + $0x78] sm:$0xff]  ;;  %v3819_v0 = vsel %vm74_vm1, %v3791_v26, 0  ;;  %v3779_v27 = vld [vmem:[%s5492_s3 + $0x50] sm:$0xff] }
0x1314   :  { %3621 = vadd.xlane.f32.xlu1 %v3620_v30  ;;  %v3792_v60 = vpack.c.bf16 %v3784_v58, %v3783_v9 }
0x1315   :  { %v3619_v21 = vmul.f32 %v3617_v50, %v3617_v50 }
0x1317   :  { %v3623_v22 = vsel %vm74_vm1, %v3619_v21, 0.0 }
0x1318   :  { %3624 = vadd.xlane.f32.xlu0 %v3623_v22  ;;  %v3777_v22 = vld [vmem:[%s5492_s3 + $0x40] sm:$0xff] }
0x1319   :  { %v3789_v51 = vpack.c.bf16 %v3778_v31, %v3777_v22 }
0x139d   :  { %v3622_v12 = vpop.xlane.xlu1 %3621 }
0x139e   :  { %v3626_v33 = vmul.f32 0.03125, %v3622_v12  ;;  %v3813_v12 = vsel %vm74_vm1, %v3789_v51, 0 }
0x13a0   :  { %v3628_v61 = vadd.f32 1e-12, %v3626_v33  ;;  %v3775_v33 = vld [vmem:[%s5492_s3 + $0x30] sm:$0xff] }
0x13a1   :  { %v3625_v62 = vpop.xlane.xlu0 %3624 }
0x13a2   :  { %4588 = vrsqrt.f32 %v3628_v61  ;;  %v3627_v24 = vmul.f32 0.03125, %v3625_v62  ;;  %v3776_v61 = vld [vmem:[%s5492_s3 + $0x38] sm:$0xff] }
0x13a3   :  { %v3788_v62 = vpack.c.bf16 %v3776_v61, %v3775_v33 }
0x13a4   :  { %v3629_v25 = vadd.f32 1e-12, %v3627_v24 }
0x13a5   :  { %v3810_v24 = vsel %vm74_vm1, %v3788_v62, 0 }
0x13a6   :  { %4590 = vrsqrt.f32 %v3629_v25 }
0x13af   :  { %v4589_v16 = vpop.eup %4588 }
0x13b0   :  { %v3632_v34 = vmul.f32 %v4589_v16, %v3616_v5  ;;  %v3822_v5 = vsel %vm74_vm1, %v3792_v60, 0 }
0x13b2   :  { %v3638_v10 = vmul.f32 %v3637_v2, %v3632_v34 }
0x13b3   :  { %v4591_v18 = vpop.eup %4590 }
0x13b4   :  { %v3633_v59 = vmul.f32 %v4591_v18, %v3617_v50  ;;  %v3644_v13 = vadd.f32 %v3643_v11, %v3638_v10  ;;  %v3780_v50 = vld [vmem:[%s5492_s3 + $0x58] sm:$0xff] }
0x13b5   :  { %v3790_v30 = vpack.c.bf16 %v3780_v50, %v3779_v27 }
0x13b6   :  { %v3639_v23 = vmul.f32 %v3637_v2, %v3633_v59 }
0x13b7   :  { %v3816_v21 = vsel %vm74_vm1, %v3790_v30, 0 }
0x13b8   :  { %v3645_v28 = vadd.f32 %v3643_v11, %v3639_v23 }
0x13ba   :  { %v3647_v15 = vpack.c.bf16 %v3645_v28, %v3644_v13  ;;  %v3773_v28 = vld [vmem:[%s5492_s3 + $0x20] sm:$0xff] }
0x13bc   :  { %4409 = vmatmul.mubr.msk.bf16.vlgmr.msra.gmra.mxu0 %vm74_vm1, %v3647_v15  ;;  %v3774_v15 = vld [vmem:[%s5492_s3 + $0x28] sm:$0xff] }
0x13bd   :  { %4428 = vmatprep.mubr.msk.bf16.mxu0 %vm4631_vm0, %v4630_v1  ;;  %4413 = vmatpush3.bf16.xpose.msra.mxu0 %v3822_v5 }
0x13be   :  { %4414 = vmatprep.subr.bf16.mxu0 %v4630_v1 }
0x13c5   :  { %4415 = vmatpush3.bf16.xpose.msra.mxu0 %v3819_v0 }
0x13c6   :  { %4416 = vmatprep.subr.bf16.mxu0 %v4630_v1 }
0x13cd   :  { %4417 = vmatpush3.bf16.xpose.msra.mxu0 %v3816_v21 }
0x13ce   :  { %4418 = vmatprep.subr.bf16.mxu0 %v4630_v1 }
0x13d5   :  { %4419 = vmatpush3.bf16.xpose.msra.mxu0 %v3813_v12 }
0x13d6   :  { %4420 = vmatprep.subr.bf16.mxu0 %v4630_v1 }
0x13dd   :  { %4421 = vmatpush3.bf16.xpose.msra.mxu0 %v3810_v24 }
0x13de   :  { %4422 = vmatprep.subr.bf16.mxu0 %v4630_v1 }
0x147c   :  { %v3705_v7 = vpop.f32.mrf.mxu0 }
0x147d   :  { %v3706_v29 = vadd.f32 %v3705_v7, %v3655_v19 }
0x147e   :  { %v4410_v49 = vpop.f32.mrf.mxu0 }
0x147f   :  { %v3712_v4 = vmul.f32 %v3706_v29, %v3706_v29  ;;  %v3772_v49 = vld [vmem:[%s5492_s3 + $0x18] sm:$0xff] }
0x1480   :  { %v3708_v36 = vpop.f32.mrf.mxu0 }
0x1481   :  { %v3714_v38 = vmul.f32 %v3712_v4, %v3706_v29  ;;  %v3709_v35 = vadd.f32 %v3708_v36, %v3655_v19  ;;  %v3787_v19 = vpack.c.bf16 %v3774_v15, %v3773_v28 }
0x1482   :  { %v4411_v39 = vpop.f32.mrf.mxu0 }
0x1483   :  { %v3716_v40 = vmul.f32 0.044715, %v3714_v38  ;;  %v3713_v20 = vmul.f32 %v3709_v35, %v3709_v35  ;;  %v3807_v7 = vsel %vm74_vm1, %v3787_v19, 0  ;;  %v3769_v38 = vld [vmem:[%s5492_s3] sm:$0xff] }
0x1484   :  { %4423 = vmatpush3.bf16.xpose.msra.mxu0 %v3807_v7 }
0x1485   :  { %v3718_v41 = vadd.f32 %v3716_v40, %v3706_v29  ;;  %v3715_v42 = vmul.f32 %v3713_v20, %v3709_v35  ;;  %4424 = vmatprep.subr.bf16.mxu0 %v4630_v1 }
0x1487   :  { %v3717_v46 = vmul.f32 0.044715, %v3715_v42  ;;  %v3720_v48 = vmul.f32 0.7978846, %v3718_v41 }
0x1489   :  { %v3719_v32 = vadd.f32 %v3717_v46, %v3709_v35  ;;  %4592 = vtanh.f32 %v3720_v48 }
0x148b   :  { %v3721_v3 = vmul.f32 0.7978846, %v3719_v32 }
0x148d   :  { %4594 = vtanh.f32 %v3721_v3  ;;  %v3759_v3 = vrot.slane %v5398_v43, %v4993_v17 }
0x1496   :  { %v4593_v52 = vpop.eup %4592 }
0x1497   :  { %v3724_v8 = vadd.f32 1.0, %v4593_v52 }
0x1499   :  { %v3726_v54 = vmul.f32 0.5, %v3724_v8 }
0x149a   :  { %v4595_v56 = vpop.eup %4594 }
0x149b   :  { %v3728_v55 = vmul.f32 %v3726_v54, %v3706_v29  ;;  %v3725_v45 = vadd.f32 1.0, %v4595_v56  ;;  %v3771_v29 = vld [vmem:[%s5492_s3 + $0x10] sm:$0xff]  ;;  %v3765_v54 = vrot.slane %v5398_v43, %v5012_v6 }
0x149c   :  { %v3786_v4 = vpack.c.bf16 %v3772_v49, %v3771_v29 }
0x149d   :  { %v3730_v53 = vsel %vm74_vm1, %v3728_v55, 0.0  ;;  %v3727_v37 = vmul.f32 0.5, %v3725_v45 }
0x149e   :  { %3731 = vadd.xlane.f32.xlu1 %v3730_v53  ;;  %v3804_v36 = vsel %vm74_vm1, %v3786_v4, 0 }
0x149f   :  { %v3729_v47 = vmul.f32 %v3727_v37, %v3709_v35  ;;  %4425 = vmatpush3.bf16.xpose.msra.mxu0 %v3804_v36  ;;  %v3770_v35 = vld [vmem:[%s5492_s3 + $0x8] sm:$0xff]  ;;  %s4640_s3 = smov [#allocation2]  }
0x14a0   :  { %4426 = vmatprep.subr.bf16.mxu0 %v4630_v1  ;;  %v3785_v39 = vpack.c.bf16 %v3770_v35, %v3769_v38  ;;  %s3906_s25 = sshll.u32 %s4640_s3, 4  ;;  %s3907_s25 = int_to_ptr.vmem [resolvable:$true] %s3906_s25 }
0x14a1   :  { %v3733_v57 = vsel %vm74_vm1, %v3729_v47, 0.0  ;;  %s4608_s26 = scalar_lea.vmem %s3907_s25, 256  ;;  %p4613_p1 = scmp.lt.s32.totalorder %s3907_s25, %s3907_s25 }
0x14a2   :  { %3734 = vadd.xlane.f32.xlu0 %v3733_v57  ;;  %v3801_v40 = vsel %vm74_vm1, %v3785_v39, 0  ;;  %v3796_v57 = vrot.slane %v5398_v43, %v5017_v14  ;;  %p4609_p0 = scmp.ne.s32.totalorder %s3907_s25, %s4608_s26  ;;  %p4614_p2 = scmp.lt.s32.totalorder %s4608_s26, %s4608_s26 }
0x14a4   :  { %p4615_p3 = por %p4614_p2, %p4613_p1 }
0x14a6   :  { %p4616_p4 = pnand %p4615_p3, %p4609_p0 }
0x14a7   :  { %4427 = vmatpush3.bf16.xpose.msra.mxu0 %v3801_v40 }
0x1527   :  { %v3732_v25 = vpop.xlane.xlu1 %3731 }
0x1528   :  { %v3736_v16 = vmul.f32 0.03125, %v3732_v25 }
0x152a   :  { %v3738_v34 = vsub.f32 %v3728_v55, %v3736_v16 }
0x152b   :  { %v3735_v2 = vpop.xlane.xlu0 %3734 }
0x152c   :  { %v3737_v18 = vmul.f32 0.03125, %v3735_v2  ;;  %v3740_v59 = vmul.f32 %v3738_v34, %v3738_v34 }
0x152e   :  { %v3739_v10 = vsub.f32 %v3729_v47, %v3737_v18  ;;  %v3742_v11 = vsel %vm74_vm1, %v3740_v59, 0.0 }
0x152f   :  { %3743 = vadd.xlane.f32.xlu1 %v3742_v11 }
0x1530   :  { %v3741_v23 = vmul.f32 %v3739_v10, %v3739_v10 }
0x1532   :  { %v3745_v13 = vsel %vm74_vm1, %v3741_v23, 0.0 }
0x1533   :  { %3746 = vadd.xlane.f32.xlu0 %v3745_v13 }
0x15b8   :  { %v3744_v20 = vpop.xlane.xlu1 %3743 }
0x15b9   :  { %v3748_v41 = vmul.f32 0.03125, %v3744_v20 }
0x15bb   :  { %v3750_v42 = vadd.f32 1e-12, %v3748_v41 }
0x15bc   :  { %v3747_v46 = vpop.xlane.xlu0 %3746 }
0x15bd   :  { %4596 = vrsqrt.f32 %v3750_v42  ;;  %v3749_v48 = vmul.f32 0.03125, %v3747_v46 }
0x15bf   :  { %v3751_v32 = vadd.f32 1e-12, %v3749_v48 }
0x15c1   :  { %4598 = vrsqrt.f32 %v3751_v32 }
0x15ca   :  { %v4597_v1 = vpop.eup %4596 }
0x15cb   :  { %v3754_v52 = vmul.f32 %v4597_v1, %v3738_v34 }
0x15cd   :  { %v3760_v55 = vmul.f32 %v3759_v3, %v3754_v52 }
0x15ce   :  { %v4599_v8 = vpop.eup %4598 }
0x15cf   :  { %v3755_v56 = vmul.f32 %v4599_v8, %v3739_v10  ;;  %v3766_v53 = vadd.f32 %v3765_v54, %v3760_v55 }
0x15d1   :  { %v3761_v45 = vmul.f32 %v3759_v3, %v3755_v56 }
0x15d3   :  { %v3767_v37 = vadd.f32 %v3765_v54, %v3761_v45 }
0x15d5   :  { %v3768_v47 = vpack.c.bf16 %v3767_v37, %v3766_v53 }
0x15d7   :  { %4429 = vmatmul.mubr.msk.bf16.vlgmr.msra.gmra.mxu0 %vm74_vm1, %v3768_v47 }
0x1697   :  { %v3858_v9 = vpop.f32.mrf.mxu0 }
0x1698   :  { %v3859_v58 = vadd.f32 %v3858_v9, %v3796_v57 }
0x1699   :  { %v4430_v60 = vpop.f32.mrf.mxu0 }
0x169a   :  { %3865 = vst [vmem:[#allocation2] sm:$0xff] %v3859_v58  ;;  %3869 = vmax.xlane.f32.xlu1 %v3859_v58 }
0x169b   :  { %v3861_v17 = vpop.f32.mrf.mxu0 }
0x169c   :  { %v3862_v44 = vadd.f32 %v3861_v17, %v3796_v57 }
0x169d   :  { %v4431_v63 = vpop.f32.mrf.mxu0 }
0x169e   :  { %3866 = vst [vmem:[#allocation2 + $0x8] sm:$0xff] %v3862_v44  ;;  %3871 = vmax.xlane.f32.xlu0 %v3862_v44 }
0x1723   :  { %v3870_v6 = vpop.xlane.xlu1 %3869 }
0x1724   :  { %v3873_v5 = vsub.f32 %v3859_v58, %v3870_v6 }
0x1726   :  { %v3875_v26 = vmul.f32 1.442695, %v3873_v5 }
0x1727   :  { %v3872_v0 = vpop.xlane.xlu0 %3871 }
0x1728   :  { %4600 = vpow2.f32 %v3875_v26  ;;  %v3874_v27 = vsub.f32 %v3862_v44, %v3872_v0 }
0x172a   :  { %v3877_v50 = vmul.f32 1.442695, %v3874_v27 }
0x172c   :  { %4602 = vpow2.f32 %v3877_v50 }
0x1735   :  { %v4601_v30 = vpop.eup %4600 }
0x1736   :  { %3879 = vadd.xlane.f32.xlu1 %v4601_v30 }
0x1739   :  { %v4603_v14 = vpop.eup %4602 }
0x173a   :  { %3881 = vadd.xlane.f32.xlu0 %v4603_v14 }
0x173b   :  { %4619 = shalt.err (!%p4616_p4)
}
0x173c   :  { %s4641_s27 = smov 128   ;;  %v3867_v24 = vld [vmem:[%s5491_s2] sm:$0xff]  ;;  %v3868_v25 = vld [vmem:[%s5491_s2 + $0x8] sm:$0xff] }
0x173d   :  { %3912 = dma.vmem_to_hbm [thread:$0]  %s3907_s25, 256, %s5500_s11, [#allocation3], %s4641_s27, %s4641_s27, %s4637_s21  }
0x17bf   :  { %v3880_v43 = vpop.xlane.xlu1 %3879 }
0x17c0   :  { %4604 = vlog2.f32 %v3880_v43 }
0x17c3   :  { %v3882_v21 = vpop.xlane.xlu0 %3881 }
0x17c4   :  { %4606 = vlog2.f32 %v3882_v21 }
0x17cd   :  { %v4605_v22 = vpop.eup %4604 }
0x17ce   :  { %v3884_v31 = vmul.f32 0.6931472, %v4605_v22 }
0x17d0   :  { %v3887_v51 = vadd.f32 %v3884_v31, %v3870_v6 }
0x17d1   :  { %v4607_v12 = vpop.eup %4606 }
0x17d2   :  { %v3886_v33 = vmul.f32 0.6931472, %v4607_v12  ;;  %v3889_v61 = vsub.f32 %v3887_v51, %v3859_v58 }
0x17d4   :  { %v3888_v62 = vadd.f32 %v3886_v33, %v3872_v0  ;;  %v3891_v34 = vmul.f32 %v3889_v61, %v3867_v24 }
0x17d6   :  { %v3890_v16 = vsub.f32 %v3888_v62, %v3862_v44 }
0x17d8   :  { %v3892_v2 = vmul.f32 %v3890_v16, %v3868_v25 }
0x17da   :  { %v3893_v18 = vadd.f32 %v3892_v2, %v3891_v34 }
0x17dc   :  { %v3894_v59 = vrot.slane %v3893_v18, 4 }
0x17de   :  { %v3895_v10 = vadd.f32 %v3894_v59, %v3893_v18 }
0x17e0   :  { %v3896_v11 = vrot.slane %v3895_v10, 2 }
0x17e2   :  { %v3897_v23 = vadd.f32 %v3896_v11, %v3895_v10 }
0x17e4   :  { %v3898_v13 = vrot.slane %v3897_v23, 1 }
0x17e6   :  { %v3899_v28 = vadd.f32 %v3898_v13, %v3897_v23 }
0x17e8   :  { %3900 = vst [vmem:[%s5501_s12] sm:$0x1] %v3899_v28 }
0x17e9   :  { %4628 = dma.done.wait [#allocation3], 256  }
0x17ea   :  { %4629 = vsyncadd [#allocation3], 4294967040 }
0x17eb   :  { %3920 = vsyncpa [#allocation3], 1 }

</bundles_post_ra>
